<compile_context>
chip_gen: v7x
topology: tpu7x:2x2x1
jax: 0.10.0
libtpu: 0.0.40
codegen_flags: <defaults>
</compile_context>

<pallas_src>
import functools
import numpy as np
import jax
import jax.numpy as jnp
from jax import lax
from jax.experimental import pallas as pl
from jax.experimental.pallas import tpu as pltpu

LN_EPS = 1e-6          # matches nn.LayerNorm(d_model, eps=1e-06)
NEG_INF = -1e9         # matches masked_fill(mask == 0, -1e9)


# --------------------------------------------------------------------------
# in-kernel helpers (f32 VPU math; bf16 only as MXU weight input)
# --------------------------------------------------------------------------
def _layernorm(x, gamma, beta):
    mu = jnp.mean(x, axis=-1, keepdims=True)
    var = jnp.mean(jnp.square(x - mu), axis=-1, keepdims=True)
    return (x - mu) * lax.rsqrt(var + LN_EPS) * gamma + beta


def _mha_sublayer(x2, kv2, bias, w_q, w_kv, w_o, gamma, beta,
                  *, B, Lq, Lk, n_head, d_k, d_v):
    """Post-norm multi-head attention sublayer.

    x2   : (B*Lq, D) f32   query stream / residual
    kv2  : (B*Lk, D) f32   key/value source (== x2 for self-attention)
    bias : (B, Lq, Lk) or (B, 1, Lk) f32 additive mask bias
    w_q  : None (self-attn, fused into w_kv) or (D, H*dk) bf16
    w_kv : (D, H*(2dk+dv)) bf16 fused QKV  OR  (D, H*(dk+dv)) bf16 fused KV
    w_o  : (H*dv, D) bf16 (head-major rows)
    """
    bf = jnp.bfloat16
    inv_temp = 1.0 / float(np.sqrt(d_k))

    if w_q is None:
        # self-attention: ONE fused QKV matmul, M = B*Lq
        C = 2 * d_k + d_v
        qkv = jnp.dot(x2.astype(bf), w_kv, preferred_element_type=jnp.float32)
        q3 = qkv.reshape(B, Lq, n_head * C)          # leading-dim split only
        kv3 = q3
        q_stride, q_off, k_off, v_off = C, 0, d_k, 2 * d_k
    else:
        # cross-attention: ONE Q matmul + ONE fused KV matmul
        C = d_k + d_v
        q = jnp.dot(x2.astype(bf), w_q, preferred_element_type=jnp.float32)
        kv = jnp.dot(kv2.astype(bf), w_kv, preferred_element_type=jnp.float32)
        q3 = q.reshape(B, Lq, n_head * d_k)
        kv3 = kv.reshape(B, Lk, n_head * C)
        q_stride, q_off, k_off, v_off = d_k, 0, 0, d_k

    heads = []
    for h in range(n_head):                          # static unroll (H small)
        qo = h * q_stride + q_off
        ko = h * C + k_off
        vo = h * C + v_off
        qh = q3[:, :, qo:qo + d_k]                   # (B, Lq, dk) lane slice
        kh = kv3[:, :, ko:ko + d_k]                  # (B, Lk, dk)
        vh = kv3[:, :, vo:vo + d_v]                  # (B, Lk, dv)
        # act-act matmuls stay f32 (no bf16 repack); single batch dim b.
        s = jnp.einsum('bqd,bkd->bqk', qh, kh,
                       preferred_element_type=jnp.float32) * inv_temp
        s = s + bias                                 # additive mask bias
        s = s - jnp.max(s, axis=-1, keepdims=True)
        p = jnp.exp(s)
        p = p * pl.reciprocal(jnp.sum(p, axis=-1, keepdims=True), approx=True)
        heads.append(jnp.einsum('bqk,bkd->bqd', p, vh,
                                preferred_element_type=jnp.float32))
    oc = jnp.concatenate(heads, axis=-1)             # (B, Lq, H*dv)
    oc = oc.reshape(B * Lq, n_head * d_v)
    # single output projection — MXU accumulates across heads
    out = jnp.dot(oc.astype(bf), w_o, preferred_element_type=jnp.float32) + x2
    return _layernorm(out, gamma, beta)


def _ffn_sublayer(x2, w1, b1, w2, b2, gamma, beta):
    bf = jnp.bfloat16
    h = jnp.dot(x2.astype(bf), w1, preferred_element_type=jnp.float32) + b1
    h = jnp.maximum(h, 0.0)
    y = jnp.dot(h.astype(bf), w2, preferred_element_type=jnp.float32) + b2
    return _layernorm(y + x2, gamma, beta)


# --------------------------------------------------------------------------
# fused decoder-stack kernel: grid = (n_layers,)   (batch folded into block)
# --------------------------------------------------------------------------
def decoder_stack_kernel(x_ref, pos_ref, ln0_ref, enc_ref, sb_ref, cb_ref,
                         s_wqkv_ref, s_wo_ref, c_wq_ref, c_wkv_ref, c_wo_ref,
                         f_w1_ref, f_w2_ref, small_ref,
                         o_ref, x_acc,
                         *, B, Lq, Lk, d_model, d_inner, n_head, d_k, d_v):
    layer = pl.program_id(0)
    n_layers = pl.num_programs(0)
    D = d_model

    # prologue (layer 0 only): x = LayerNorm(dropout(emb + pos)); dropout = identity
    @pl.when(layer == 0)
    def _():
        ln0 = ln0_ref[...]                                 # (2, D): [gamma; beta]
        x0 = x_ref[...] + pos_ref[...][None]               # (B, Lq, D)
        x0 = x0.reshape(B * Lq, D)
        x_acc[...] = _layernorm(x0, ln0[0:1, :], ln0[1:2, :])

    x = x_acc[...]                                         # (B*Lq, D) VMEM-resident
    enc2 = enc_ref[...].reshape(B * Lk, D)                 # (B*Lk, D)

    # one packed DMA for all small per-layer f32 params
    small = small_ref[0]                                   # (8, pw)
    slf_g, slf_b = small[0:1, :D], small[1:2, :D]
    enc_g, enc_b = small[2:3, :D], small[3:4, :D]
    ffn_g, ffn_b = small[4:5, :D], small[5:6, :D]
    ffn_b1 = small[6:7, :d_inner]
    ffn_b2 = small[7:8, :D]

    slf_bias = sb_ref[...]                                 # (B, Lq, Lq)
    crs_bias = cb_ref[...]                                 # (B, 1, Lk)

    # self-attention sublayer (fused QKV)
    x = _mha_sublayer(x, x, slf_bias, None, s_wqkv_ref[0], s_wo_ref[0],
                      slf_g, slf_b, B=B, Lq=Lq, Lk=Lq,
                      n_head=n_head, d_k=d_k, d_v=d_v)
    # encoder-decoder attention sublayer (fused KV on encoder output)
    x = _mha_sublayer(x, enc2, crs_bias, c_wq_ref[0], c_wkv_ref[0], c_wo_ref[0],
                      enc_g, enc_b, B=B, Lq=Lq, Lk=Lk,
                      n_head=n_head, d_k=d_k, d_v=d_v)
    # position-wise FFN sublayer
    x = _ffn_sublayer(x, f_w1_ref[0], ffn_b1, f_w2_ref[0], ffn_b2, ffn_g, ffn_b)

    x_acc[...] = x

    @pl.when(layer == n_layers - 1)
    def _():
        o_ref[...] = x


def decoder_stack(x_emb, pos, ln0, enc_out, slf_bias, crs_bias, layers,
                  *, n_head, d_k, d_v):
    B, Lq, D = x_emb.shape
    Lk = enc_out.shape[1]
    n_layers = layers["slf_wqkv"].shape[0]
    d_inner = layers["ffn_w1"].shape[-1]

    def full(arr):         # whole array, constant block index -> DMA'd once
        nd = arr.ndim
        return pl.BlockSpec(arr.shape, lambda l, _nd=nd: (0,) * _nd)

    def layered(arr):      # block over the stacked-layer leading axis
        nd = arr.ndim
        return pl.BlockSpec((1,) + arr.shape[1:],
                            lambda l, _nd=nd: (l,) + (0,) * (_nd - 1))

    layer_order = ["slf_wqkv", "slf_wo", "enc_wq", "enc_wkv", "enc_wo",
                   "ffn_w1", "ffn_w2", "small"]
    layer_args = [layers[k] for k in layer_order]

    kern = functools.partial(decoder_stack_kernel, B=B, Lq=Lq, Lk=Lk,
                             d_model=D, d_inner=d_inner,
                             n_head=n_head, d_k=d_k, d_v=d_v)
    out = pl.pallas_call(
        kern,
        out_shape=jax.ShapeDtypeStruct((B * Lq, D), jnp.float32),
        grid=(n_layers,),
        in_specs=([full(x_emb), full(pos), full(ln0), full(enc_out),
                   full(slf_bias), full(crs_bias)]
                  + [layered(a) for a in layer_args]),
        out_specs=pl.BlockSpec((B * Lq, D), lambda l: (0, 0)),
        scratch_shapes=[pltpu.VMEM((B * Lq, D), jnp.float32)],
        compiler_params=pltpu.CompilerParams(
            dimension_semantics=("arbitrary",),
            vmem_limit_bytes=48 * 1024 * 1024),   # safe on v7x's 64 MiB VMEM
    )(x_emb, pos, ln0, enc_out, slf_bias, crs_bias, *layer_args)
    return out.reshape(B, Lq, D)


# --------------------------------------------------------------------------
# parameter construction (deterministic, in-script)
# --------------------------------------------------------------------------
def sinusoid_table(n_position, d_hid):
    pos = np.arange(n_position, dtype=np.float64)[:, None]
    i = np.arange(d_hid, dtype=np.float64)[None, :]
    angle = pos / np.power(10000.0, 2.0 * (i // 2) / d_hid)
    table = np.sin(angle)        # reference applies np.sin to even AND odd columns
    return jnp.asarray(table, jnp.float32)


def init_params(key, *, n_trg_vocab, d_word_vec, n_layers, n_head, d_k, d_v,
                d_model, d_inner, pad_idx, n_position):
    keys = jax.random.split(key, 1 + n_layers)
    emb = jax.random.normal(keys[0], (n_trg_vocab, d_word_vec), jnp.float32)
    emb = emb.at[pad_idx].set(0.0)          # nn.Embedding padding_idx row is zero

    def lin(kk, fan_in, shape):
        bound = 1.0 / np.sqrt(fan_in)
        return jax.random.uniform(kk, shape, jnp.float32, -bound, bound)

    def head_major_cols(w):                 # (H, D, c) -> (D, H*c) head-major columns
        H, D, c = w.shape
        return jnp.transpose(w, (1, 0, 2)).reshape(D, H * c)

    pw = max(d_model, d_inner)              # packed-row width for small params

    def pad_row(v):
        v = v.reshape(1, -1)
        return jnp.pad(v, ((0, 0), (0, pw - v.shape[-1])))

    names = ["slf_wqkv", "slf_wo", "enc_wq", "enc_wkv", "enc_wo",
             "ffn_w1", "ffn_w2", "small"]
    per = {n: [] for n in names}
    ones_d = jnp.ones((d_model,), jnp.float32)
    zeros_d = jnp.zeros((d_model,), jnp.float32)
    for li in range(n_layers):
        k = jax.random.split(keys[1 + li], 10)
        slf_wq = lin(k[0], d_model, (n_head, d_model, d_k))
        slf_wk = lin(k[1], d_model, (n_head, d_model, d_k))
        slf_wv = lin(k[2], d_model, (n_head, d_model, d_v))
        slf_wo = lin(k[3], n_head * d_v, (n_head, d_v, d_model))
        enc_wq = lin(k[4], d_model, (n_head, d_model, d_k))
        enc_wk = lin(k[5], d_model, (n_head, d_model, d_k))
        enc_wv = lin(k[6], d_model, (n_head, d_model, d_v))
        enc_wo = lin(k[7], n_head * d_v, (n_head, d_v, d_model))
        ffn_w1 = lin(k[8], d_model, (d_model, d_inner))
        ffn_w2 = lin(k[9], d_inner, (d_inner, d_model))

        per["slf_wqkv"].append(head_major_cols(
            jnp.concatenate([slf_wq, slf_wk, slf_wv], axis=-1)))   # (D, H*(2dk+dv))
        per["slf_wo"].append(slf_wo.reshape(n_head * d_v, d_model))
        per["enc_wq"].append(head_major_cols(enc_wq))              # (D, H*dk)
        per["enc_wkv"].append(head_major_cols(
            jnp.concatenate([enc_wk, enc_wv], axis=-1)))           # (D, H*(dk+dv))
        per["enc_wo"].append(enc_wo.reshape(n_head * d_v, d_model))
        per["ffn_w1"].append(ffn_w1)
        per["ffn_w2"].append(ffn_w2)
        # packed small params: [slf_g, slf_b, enc_g, enc_b, ffn_g, ffn_b, b1, b2]
        per["small"].append(jnp.concatenate([
            pad_row(ones_d), pad_row(zeros_d),
            pad_row(ones_d), pad_row(zeros_d),
            pad_row(ones_d), pad_row(zeros_d),
            pad_row(jnp.zeros((d_inner,), jnp.float32)),
            pad_row(zeros_d)], axis=0))                            # (8, pw)

    layers = {
        # matmul weights stored bf16 (MXU input / half the DMA bytes)
        "slf_wqkv": jnp.stack(per["slf_wqkv"]).astype(jnp.bfloat16),
        "slf_wo":   jnp.stack(per["slf_wo"]).astype(jnp.bfloat16),
        "enc_wq":   jnp.stack(per["enc_wq"]).astype(jnp.bfloat16),
        "enc_wkv":  jnp.stack(per["enc_wkv"]).astype(jnp.bfloat16),
        "enc_wo":   jnp.stack(per["enc_wo"]).astype(jnp.bfloat16),
        "ffn_w1":   jnp.stack(per["ffn_w1"]).astype(jnp.bfloat16),
        "ffn_w2":   jnp.stack(per["ffn_w2"]).astype(jnp.bfloat16),
        # one coalesced f32 array for all small per-layer params
        "small":    jnp.stack(per["small"]).astype(jnp.float32),
    }
    ln0 = jnp.stack([ones_d, zeros_d], axis=0)                     # (2, D)
    return {"emb": emb,
            "pos_table": sinusoid_table(n_position, d_word_vec),
            "ln0": ln0,
            "layers": layers}


# --------------------------------------------------------------------------
# Decoder forward (mirrors Decoder.forward / post-norm DecoderLayer stack)
# --------------------------------------------------------------------------
def decoder_forward(params, trg_seq, trg_mask, enc_output, src_mask,
                    *, d_model, n_head, d_k, d_v, scale_emb=False):
    B, Lq = trg_seq.shape
    Lk = enc_output.shape[1]

    # trg_word_emb: embedding gather (plain-JAX glue)
    x = params["emb"][trg_seq]
    if scale_emb:
        x = x * (d_model * 0.5)   # preserved verbatim from the reference code

    pos = params["pos_table"][:Lq]

    # masks -> additive score biases, computed ONCE and reused by every layer.
    # Cross bias stays compact (B, 1, Lk).
    slf_keep = jnp.broadcast_to(trg_mask != 0, (B, Lq, Lq))
    crs_keep = jnp.broadcast_to(src_mask != 0, (B, 1, Lk))
    slf_bias = jnp.where(slf_keep, 0.0, NEG_INF).astype(jnp.float32)
    crs_bias = jnp.where(crs_keep, 0.0, NEG_INF).astype(jnp.float32)

    return decoder_stack(x.astype(jnp.float32), pos, params["ln0"],
                         enc_output.astype(jnp.float32),
                         slf_bias, crs_bias, params["layers"],
                         n_head=n_head, d_k=d_k, d_v=d_v)


# --------------------------------------------------------------------------
if __name__ == "__main__":
    B, L_trg, L_src = 2, 8, 8
    n_trg_vocab, pad_idx = 50, 0
    d_model = d_word_vec = 32
    n_layers, n_head, d_k, d_v, d_inner = 2, 4, 8, 8, 64
    n_position = 200

    key = jax.random.PRNGKey(0)
    k_par, k_trg, k_enc = jax.random.split(key, 3)

    params = init_params(k_par, n_trg_vocab=n_trg_vocab, d_word_vec=d_word_vec,
                         n_layers=n_layers, n_head=n_head, d_k=d_k, d_v=d_v,
                         d_model=d_model, d_inner=d_inner, pad_idx=pad_idx,
                         n_position=n_position)

    # target token ids (pad the tail of batch element 1)
    trg_seq = jax.random.randint(k_trg, (B, L_trg), 1, n_trg_vocab, dtype=jnp.int32)
    trg_seq = trg_seq.at[1, -2:].set(pad_idx)

    # encoder output and masks
    enc_output = jax.random.normal(k_enc, (B, L_src, d_model), jnp.float32)
    pad_mask = (trg_seq != pad_idx)[:, None, :]                    # (B, 1, L_trg)
    causal = jnp.tril(jnp.ones((1, L_trg, L_trg), dtype=bool))     # (1, L, L)
    trg_mask = pad_mask & causal                                   # (B, L, L)
    src_mask = jnp.ones((B, 1, L_src), dtype=bool).at[1, 0, -1].set(False)

    out = decoder_forward(params, trg_seq, trg_mask, enc_output, src_mask,
                          d_model=d_model, n_head=n_head, d_k=d_k, d_v=d_v,
                          scale_emb=False)
    out = jax.block_until_ready(out)

    assert out.shape == (B, L_trg, d_model), out.shape
    assert bool(jnp.all(jnp.isfinite(out)))
    print("KERNEL_OK")
</pallas_src>

<mosaic_0001>
module attributes {stable_mosaic.version = 11 : i64} {
  func.func @decoder_stack_kernel(%arg0: i32, %arg1: memref<2x8x32xf32, #tpu.memory_space<vmem>>, %arg2: memref<8x32xf32, #tpu.memory_space<vmem>>, %arg3: memref<2x32xf32, #tpu.memory_space<vmem>>, %arg4: memref<2x8x32xf32, #tpu.memory_space<vmem>>, %arg5: memref<2x8x8xf32, #tpu.memory_space<vmem>>, %arg6: memref<2x1x8xf32, #tpu.memory_space<vmem>>, %arg7: memref<1x32x96xbf16, #tpu.memory_space<vmem>>, %arg8: memref<1x32x32xbf16, #tpu.memory_space<vmem>>, %arg9: memref<1x32x32xbf16, #tpu.memory_space<vmem>>, %arg10: memref<1x32x64xbf16, #tpu.memory_space<vmem>>, %arg11: memref<1x32x32xbf16, #tpu.memory_space<vmem>>, %arg12: memref<1x32x64xbf16, #tpu.memory_space<vmem>>, %arg13: memref<1x64x32xbf16, #tpu.memory_space<vmem>>, %arg14: memref<1x8x64xf32, #tpu.memory_space<vmem>>, %arg15: memref<16x32xf32, #tpu.memory_space<vmem>>, %arg16: memref<16x32xf32, #tpu.memory_space<vmem>>) attributes {dimension_semantics = [#tpu.dimension_semantics<arbitrary>], iteration_bounds = array<i64: 2>, scalar_prefetch = 0 : i64, scratch_operands = 1 : i64, tpu.core_type = #tpu.core_type<tc>, window_params = [{pipeline_mode = #tpu.pipeline_mode<synchronous>, transform_indices = @transform_0, window_bounds = array<i64: 2, 8, 32>}, {pipeline_mode = #tpu.pipeline_mode<synchronous>, transform_indices = @transform_1, window_bounds = array<i64: 8, 32>}, {pipeline_mode = #tpu.pipeline_mode<synchronous>, transform_indices = @transform_2, window_bounds = array<i64: 2, 32>}, {pipeline_mode = #tpu.pipeline_mode<synchronous>, transform_indices = @transform_3, window_bounds = array<i64: 2, 8, 32>}, {pipeline_mode = #tpu.pipeline_mode<synchronous>, transform_indices = @transform_4, window_bounds = array<i64: 2, 8, 8>}, {pipeline_mode = #tpu.pipeline_mode<synchronous>, transform_indices = @transform_5, window_bounds = array<i64: 2, 1, 8>}, {transform_indices = @transform_6, window_bounds = array<i64: 1, 32, 96>}, {transform_indices = @transform_7, window_bounds = array<i64: 1, 32, 32>}, {transform_indices = @transform_8, window_bounds = array<i64: 1, 32, 32>}, {transform_indices = @transform_9, window_bounds = array<i64: 1, 32, 64>}, {transform_indices = @transform_10, window_bounds = array<i64: 1, 32, 32>}, {transform_indices = @transform_11, window_bounds = array<i64: 1, 32, 64>}, {transform_indices = @transform_12, window_bounds = array<i64: 1, 64, 32>}, {transform_indices = @transform_13, window_bounds = array<i64: 1, 8, 64>}, {pipeline_mode = #tpu.pipeline_mode<synchronous>, transform_indices = @transform_14, window_bounds = array<i64: 16, 32>}]} {
    %c0_i32 = arith.constant 0 : i32
    %0 = arith.cmpi eq, %arg0, %c0_i32 : i32
    %1 = arith.extui %0 : i1 to i32
    %c0_i32_0 = arith.constant 0 : i32
    %2 = arith.cmpi ne, %1, %c0_i32_0 : i32
    scf.if %2 {
      %c0_100 = arith.constant 0 : index
      %c0_101 = arith.constant 0 : index
      %280 = vector.load %arg3[%c0_100, %c0_101] : memref<2x32xf32, #tpu.memory_space<vmem>>, vector<2x32xf32>
      %c0_102 = arith.constant 0 : index
      %c0_103 = arith.constant 0 : index
      %c0_104 = arith.constant 0 : index
      %281 = vector.load %arg1[%c0_102, %c0_103, %c0_104] : memref<2x8x32xf32, #tpu.memory_space<vmem>>, vector<2x8x32xf32>
      %c0_105 = arith.constant 0 : index
      %c0_106 = arith.constant 0 : index
      %282 = vector.load %arg2[%c0_105, %c0_106] : memref<8x32xf32, #tpu.memory_space<vmem>>, vector<8x32xf32>
      %283 = vector.shape_cast %282 : vector<8x32xf32> to vector<1x8x32xf32>
      %284 = vector.broadcast %283 : vector<1x8x32xf32> to vector<2x8x32xf32>
      %285 = arith.addf %281, %284 : vector<2x8x32xf32>
      %286 = vector.shape_cast %285 : vector<2x8x32xf32> to vector<16x32xf32>
      %287 = vector.extract_strided_slice %280 {offsets = [0, 0], sizes = [1, 32], strides = [1, 1]} : vector<2x32xf32> to vector<1x32xf32>
      %288 = vector.extract_strided_slice %280 {offsets = [1, 0], sizes = [1, 32], strides = [1, 1]} : vector<2x32xf32> to vector<1x32xf32>
      %cst_107 = arith.constant dense<0.000000e+00> : vector<16xf32>
      %289 = vector.multi_reduction <add>, %286, %cst_107 [1] : vector<16x32xf32> to vector<16xf32>
      %290 = vector.shape_cast %289 : vector<16xf32> to vector<16x1xf32>
      %cst_108 = arith.constant 3.200000e+01 : f32
      %291 = vector.broadcast %cst_108 : f32 to vector<16x1xf32>
      %292 = arith.divf %290, %291 : vector<16x1xf32>
      %293 = vector.broadcast %292 : vector<16x1xf32> to vector<16x32xf32>
      %294 = arith.subf %286, %293 : vector<16x32xf32>
      %295 = arith.mulf %294, %294 : vector<16x32xf32>
      %cst_109 = arith.constant dense<0.000000e+00> : vector<16xf32>
      %296 = vector.multi_reduction <add>, %295, %cst_109 [1] : vector<16x32xf32> to vector<16xf32>
      %297 = vector.shape_cast %296 : vector<16xf32> to vector<16x1xf32>
      %cst_110 = arith.constant 3.200000e+01 : f32
      %298 = vector.broadcast %cst_110 : f32 to vector<16x1xf32>
      %299 = arith.divf %297, %298 : vector<16x1xf32>
      %300 = vector.broadcast %292 : vector<16x1xf32> to vector<16x32xf32>
      %301 = arith.subf %286, %300 : vector<16x32xf32>
      %cst_111 = arith.constant 9.99999997E-7 : f32
      %302 = vector.broadcast %cst_111 : f32 to vector<16x1xf32>
      %303 = arith.addf %299, %302 : vector<16x1xf32>
      %304 = math.rsqrt %303 : vector<16x1xf32>
      %305 = vector.broadcast %304 : vector<16x1xf32> to vector<16x32xf32>
      %306 = arith.mulf %301, %305 : vector<16x32xf32>
      %307 = vector.broadcast %287 : vector<1x32xf32> to vector<16x32xf32>
      %308 = arith.mulf %306, %307 : vector<16x32xf32>
      %309 = vector.broadcast %288 : vector<1x32xf32> to vector<16x32xf32>
      %310 = arith.addf %308, %309 : vector<16x32xf32>
      %c0_112 = arith.constant 0 : index
      %c0_113 = arith.constant 0 : index
      %311 = vector.load %arg16[%c0_112, %c0_113] : memref<16x32xf32, #tpu.memory_space<vmem>>, vector<16x32xf32>
      tpu.vector_store %arg16[%c0_112, %c0_113], %310 {strides = array<i32>} : memref<16x32xf32, #tpu.memory_space<vmem>>, vector<16x32xf32>,
    } else {
    }
    %c0 = arith.constant 0 : index
    %c0_1 = arith.constant 0 : index
    %3 = vector.load %arg16[%c0, %c0_1] : memref<16x32xf32, #tpu.memory_space<vmem>>, vector<16x32xf32>
    %c0_2 = arith.constant 0 : index
    %c0_3 = arith.constant 0 : index
    %c0_4 = arith.constant 0 : index
    %4 = vector.load %arg4[%c0_2, %c0_3, %c0_4] : memref<2x8x32xf32, #tpu.memory_space<vmem>>, vector<2x8x32xf32>
    %5 = vector.shape_cast %4 : vector<2x8x32xf32> to vector<16x32xf32>
    %c0_5 = arith.constant 0 : index
    %c0_6 = arith.constant 0 : index
    %c0_7 = arith.constant 0 : index
    %6 = vector.load %arg14[%c0_5, %c0_6, %c0_7] : memref<1x8x64xf32, #tpu.memory_space<vmem>>, vector<1x8x64xf32>
    %7 = vector.shape_cast %6 : vector<1x8x64xf32> to vector<8x64xf32>
    %8 = vector.extract_strided_slice %7 {offsets = [0, 0], sizes = [1, 32], strides = [1, 1]} : vector<8x64xf32> to vector<1x32xf32>
    %9 = vector.extract_strided_slice %7 {offsets = [1, 0], sizes = [1, 32], strides = [1, 1]} : vector<8x64xf32> to vector<1x32xf32>
    %10 = vector.extract_strided_slice %7 {offsets = [2, 0], sizes = [1, 32], strides = [1, 1]} : vector<8x64xf32> to vector<1x32xf32>
    %11 = vector.extract_strided_slice %7 {offsets = [3, 0], sizes = [1, 32], strides = [1, 1]} : vector<8x64xf32> to vector<1x32xf32>
    %12 = vector.extract_strided_slice %7 {offsets = [4, 0], sizes = [1, 32], strides = [1, 1]} : vector<8x64xf32> to vector<1x32xf32>
    %13 = vector.extract_strided_slice %7 {offsets = [5, 0], sizes = [1, 32], strides = [1, 1]} : vector<8x64xf32> to vector<1x32xf32>
    %14 = vector.extract_strided_slice %7 {offsets = [6, 0], sizes = [1, 64], strides = [1, 1]} : vector<8x64xf32> to vector<1x64xf32>
    %15 = vector.extract_strided_slice %7 {offsets = [7, 0], sizes = [1, 32], strides = [1, 1]} : vector<8x64xf32> to vector<1x32xf32>
    %c0_8 = arith.constant 0 : index
    %c0_9 = arith.constant 0 : index
    %c0_10 = arith.constant 0 : index
    %16 = vector.load %arg5[%c0_8, %c0_9, %c0_10] : memref<2x8x8xf32, #tpu.memory_space<vmem>>, vector<2x8x8xf32>
    %c0_11 = arith.constant 0 : index
    %c0_12 = arith.constant 0 : index
    %c0_13 = arith.constant 0 : index
    %17 = vector.load %arg6[%c0_11, %c0_12, %c0_13] : memref<2x1x8xf32, #tpu.memory_space<vmem>>, vector<2x1x8xf32>
    %c0_14 = arith.constant 0 : index
    %c0_15 = arith.constant 0 : index
    %c0_16 = arith.constant 0 : index
    %18 = vector.load %arg7[%c0_14, %c0_15, %c0_16] : memref<1x32x96xbf16, #tpu.memory_space<vmem>>, vector<1x32x96xbf16>
    %19 = vector.shape_cast %18 : vector<1x32x96xbf16> to vector<32x96xbf16>
    %c0_17 = arith.constant 0 : index
    %c0_18 = arith.constant 0 : index
    %c0_19 = arith.constant 0 : index
    %20 = vector.load %arg8[%c0_17, %c0_18, %c0_19] : memref<1x32x32xbf16, #tpu.memory_space<vmem>>, vector<1x32x32xbf16>
    %21 = vector.shape_cast %20 : vector<1x32x32xbf16> to vector<32x32xbf16>
    %22 = arith.truncf %3 : vector<16x32xf32> to vector<16x32xbf16>
    %cst = arith.constant dense<0.000000e+00> : vector<16x96xf32>
    %23 = tpu.matmul %22, %19, %cst {dimension_numbers = #tpu.dot_dimension_numbers<[1], [0], [0], [1], [0, 0, 1, 1], [], []>} : vector<16x32xbf16>, vector<32x96xbf16>, vector<16x96xf32> -> vector<16x96xf32>
    %24 = vector.shape_cast %23 : vector<16x96xf32> to vector<2x8x96xf32>
    %25 = vector.extract_strided_slice %24 {offsets = [0, 0, 0], sizes = [2, 8, 8], strides = [1, 1, 1]} : vector<2x8x96xf32> to vector<2x8x8xf32>
    %26 = vector.extract_strided_slice %24 {offsets = [0, 0, 8], sizes = [2, 8, 8], strides = [1, 1, 1]} : vector<2x8x96xf32> to vector<2x8x8xf32>
    %27 = vector.extract_strided_slice %24 {offsets = [0, 0, 16], sizes = [2, 8, 8], strides = [1, 1, 1]} : vector<2x8x96xf32> to vector<2x8x8xf32>
    "tpu.trace_start"() <{level = 10 : i32, message = "bqd,bkd->bqk"}> : () -> ()
    %cst_20 = arith.constant dense<0.000000e+00> : vector<2x8x8xf32>
    %28 = tpu.matmul %25, %26, %cst_20 {dimension_numbers = #tpu.dot_dimension_numbers<[2], [2], [1], [1], [0, 0, 0, 1, 1, 1], [0], [0]>} : vector<2x8x8xf32>, vector<2x8x8xf32>, vector<2x8x8xf32> -> vector<2x8x8xf32>
    "tpu.trace_stop"() : () -> ()
    %cst_21 = arith.constant 0.353553385 : f32
    %29 = vector.broadcast %cst_21 : f32 to vector<2x8x8xf32>
    %30 = arith.mulf %28, %29 : vector<2x8x8xf32>
    %31 = arith.addf %30, %16 : vector<2x8x8xf32>
    %cst_22 = arith.constant dense<0xFF800000> : vector<2x8xf32>
    %32 = vector.multi_reduction <maximumf>, %31, %cst_22 [2] : vector<2x8x8xf32> to vector<2x8xf32>
    %33 = vector.shape_cast %32 : vector<2x8xf32> to vector<2x8x1xf32>
    %34 = vector.broadcast %33 : vector<2x8x1xf32> to vector<2x8x8xf32>
    %35 = arith.subf %31, %34 : vector<2x8x8xf32>
    %36 = math.exp %35 : vector<2x8x8xf32>
    %cst_23 = arith.constant dense<0.000000e+00> : vector<2x8xf32>
    %37 = vector.multi_reduction <add>, %36, %cst_23 [2] : vector<2x8x8xf32> to vector<2x8xf32>
    %38 = vector.shape_cast %37 : vector<2x8xf32> to vector<2x8x1xf32>
    %39 = tpu.reciprocal %38 {approx = true} : vector<2x8x1xf32> -> vector<2x8x1xf32>
    %40 = vector.broadcast %39 : vector<2x8x1xf32> to vector<2x8x8xf32>
    %41 = arith.mulf %36, %40 : vector<2x8x8xf32>
    "tpu.trace_start"() <{level = 10 : i32, message = "bqk,bkd->bqd"}> : () -> ()
    %cst_24 = arith.constant dense<0.000000e+00> : vector<2x8x8xf32>
    %42 = tpu.matmul %41, %27, %cst_24 {dimension_numbers = #tpu.dot_dimension_numbers<[2], [1], [1], [2], [0, 0, 0, 1, 1, 2], [0], [0]>} : vector<2x8x8xf32>, vector<2x8x8xf32>, vector<2x8x8xf32> -> vector<2x8x8xf32>
    "tpu.trace_stop"() : () -> ()
    %43 = vector.extract_strided_slice %24 {offsets = [0, 0, 24], sizes = [2, 8, 8], strides = [1, 1, 1]} : vector<2x8x96xf32> to vector<2x8x8xf32>
    %44 = vector.extract_strided_slice %24 {offsets = [0, 0, 32], sizes = [2, 8, 8], strides = [1, 1, 1]} : vector<2x8x96xf32> to vector<2x8x8xf32>
    %45 = vector.extract_strided_slice %24 {offsets = [0, 0, 40], sizes = [2, 8, 8], strides = [1, 1, 1]} : vector<2x8x96xf32> to vector<2x8x8xf32>
    "tpu.trace_start"() <{level = 10 : i32, message = "bqd,bkd->bqk"}> : () -> ()
    %cst_25 = arith.constant dense<0.000000e+00> : vector<2x8x8xf32>
    %46 = tpu.matmul %43, %44, %cst_25 {dimension_numbers = #tpu.dot_dimension_numbers<[2], [2], [1], [1], [0, 0, 0, 1, 1, 1], [0], [0]>} : vector<2x8x8xf32>, vector<2x8x8xf32>, vector<2x8x8xf32> -> vector<2x8x8xf32>
    "tpu.trace_stop"() : () -> ()
    %cst_26 = arith.constant 0.353553385 : f32
    %47 = vector.broadcast %cst_26 : f32 to vector<2x8x8xf32>
    %48 = arith.mulf %46, %47 : vector<2x8x8xf32>
    %49 = arith.addf %48, %16 : vector<2x8x8xf32>
    %cst_27 = arith.constant dense<0xFF800000> : vector<2x8xf32>
    %50 = vector.multi_reduction <maximumf>, %49, %cst_27 [2] : vector<2x8x8xf32> to vector<2x8xf32>
    %51 = vector.shape_cast %50 : vector<2x8xf32> to vector<2x8x1xf32>
    %52 = vector.broadcast %51 : vector<2x8x1xf32> to vector<2x8x8xf32>
    %53 = arith.subf %49, %52 : vector<2x8x8xf32>
    %54 = math.exp %53 : vector<2x8x8xf32>
    %cst_28 = arith.constant dense<0.000000e+00> : vector<2x8xf32>
    %55 = vector.multi_reduction <add>, %54, %cst_28 [2] : vector<2x8x8xf32> to vector<2x8xf32>
    %56 = vector.shape_cast %55 : vector<2x8xf32> to vector<2x8x1xf32>
    %57 = tpu.reciprocal %56 {approx = true} : vector<2x8x1xf32> -> vector<2x8x1xf32>
    %58 = vector.broadcast %57 : vector<2x8x1xf32> to vector<2x8x8xf32>
    %59 = arith.mulf %54, %58 : vector<2x8x8xf32>
    "tpu.trace_start"() <{level = 10 : i32, message = "bqk,bkd->bqd"}> : () -> ()
    %cst_29 = arith.constant dense<0.000000e+00> : vector<2x8x8xf32>
    %60 = tpu.matmul %59, %45, %cst_29 {dimension_numbers = #tpu.dot_dimension_numbers<[2], [1], [1], [2], [0, 0, 0, 1, 1, 2], [0], [0]>} : vector<2x8x8xf32>, vector<2x8x8xf32>, vector<2x8x8xf32> -> vector<2x8x8xf32>
    "tpu.trace_stop"() : () -> ()
    %61 = vector.extract_strided_slice %24 {offsets = [0, 0, 48], sizes = [2, 8, 8], strides = [1, 1, 1]} : vector<2x8x96xf32> to vector<2x8x8xf32>
    %62 = vector.extract_strided_slice %24 {offsets = [0, 0, 56], sizes = [2, 8, 8], strides = [1, 1, 1]} : vector<2x8x96xf32> to vector<2x8x8xf32>
    %63 = vector.extract_strided_slice %24 {offsets = [0, 0, 64], sizes = [2, 8, 8], strides = [1, 1, 1]} : vector<2x8x96xf32> to vector<2x8x8xf32>
    "tpu.trace_start"() <{level = 10 : i32, message = "bqd,bkd->bqk"}> : () -> ()
    %cst_30 = arith.constant dense<0.000000e+00> : vector<2x8x8xf32>
    %64 = tpu.matmul %61, %62, %cst_30 {dimension_numbers = #tpu.dot_dimension_numbers<[2], [2], [1], [1], [0, 0, 0, 1, 1, 1], [0], [0]>} : vector<2x8x8xf32>, vector<2x8x8xf32>, vector<2x8x8xf32> -> vector<2x8x8xf32>
    "tpu.trace_stop"() : () -> ()
    %cst_31 = arith.constant 0.353553385 : f32
    %65 = vector.broadcast %cst_31 : f32 to vector<2x8x8xf32>
    %66 = arith.mulf %64, %65 : vector<2x8x8xf32>
    %67 = arith.addf %66, %16 : vector<2x8x8xf32>
    %cst_32 = arith.constant dense<0xFF800000> : vector<2x8xf32>
    %68 = vector.multi_reduction <maximumf>, %67, %cst_32 [2] : vector<2x8x8xf32> to vector<2x8xf32>
    %69 = vector.shape_cast %68 : vector<2x8xf32> to vector<2x8x1xf32>
    %70 = vector.broadcast %69 : vector<2x8x1xf32> to vector<2x8x8xf32>
    %71 = arith.subf %67, %70 : vector<2x8x8xf32>
    %72 = math.exp %71 : vector<2x8x8xf32>
    %cst_33 = arith.constant dense<0.000000e+00> : vector<2x8xf32>
    %73 = vector.multi_reduction <add>, %72, %cst_33 [2] : vector<2x8x8xf32> to vector<2x8xf32>
    %74 = vector.shape_cast %73 : vector<2x8xf32> to vector<2x8x1xf32>
    %75 = tpu.reciprocal %74 {approx = true} : vector<2x8x1xf32> -> vector<2x8x1xf32>
    %76 = vector.broadcast %75 : vector<2x8x1xf32> to vector<2x8x8xf32>
    %77 = arith.mulf %72, %76 : vector<2x8x8xf32>
    "tpu.trace_start"() <{level = 10 : i32, message = "bqk,bkd->bqd"}> : () -> ()
    %cst_34 = arith.constant dense<0.000000e+00> : vector<2x8x8xf32>
    %78 = tpu.matmul %77, %63, %cst_34 {dimension_numbers = #tpu.dot_dimension_numbers<[2], [1], [1], [2], [0, 0, 0, 1, 1, 2], [0], [0]>} : vector<2x8x8xf32>, vector<2x8x8xf32>, vector<2x8x8xf32> -> vector<2x8x8xf32>
    "tpu.trace_stop"() : () -> ()
    %79 = vector.extract_strided_slice %24 {offsets = [0, 0, 72], sizes = [2, 8, 8], strides = [1, 1, 1]} : vector<2x8x96xf32> to vector<2x8x8xf32>
    %80 = vector.extract_strided_slice %24 {offsets = [0, 0, 80], sizes = [2, 8, 8], strides = [1, 1, 1]} : vector<2x8x96xf32> to vector<2x8x8xf32>
    %81 = vector.extract_strided_slice %24 {offsets = [0, 0, 88], sizes = [2, 8, 8], strides = [1, 1, 1]} : vector<2x8x96xf32> to vector<2x8x8xf32>
    "tpu.trace_start"() <{level = 10 : i32, message = "bqd,bkd->bqk"}> : () -> ()
    %cst_35 = arith.constant dense<0.000000e+00> : vector<2x8x8xf32>
    %82 = tpu.matmul %79, %80, %cst_35 {dimension_numbers = #tpu.dot_dimension_numbers<[2], [2], [1], [1], [0, 0, 0, 1, 1, 1], [0], [0]>} : vector<2x8x8xf32>, vector<2x8x8xf32>, vector<2x8x8xf32> -> vector<2x8x8xf32>
    "tpu.trace_stop"() : () -> ()
    %cst_36 = arith.constant 0.353553385 : f32
    %83 = vector.broadcast %cst_36 : f32 to vector<2x8x8xf32>
    %84 = arith.mulf %82, %83 : vector<2x8x8xf32>
    %85 = arith.addf %84, %16 : vector<2x8x8xf32>
    %cst_37 = arith.constant dense<0xFF800000> : vector<2x8xf32>
    %86 = vector.multi_reduction <maximumf>, %85, %cst_37 [2] : vector<2x8x8xf32> to vector<2x8xf32>
    %87 = vector.shape_cast %86 : vector<2x8xf32> to vector<2x8x1xf32>
    %88 = vector.broadcast %87 : vector<2x8x1xf32> to vector<2x8x8xf32>
    %89 = arith.subf %85, %88 : vector<2x8x8xf32>
    %90 = math.exp %89 : vector<2x8x8xf32>
    %cst_38 = arith.constant dense<0.000000e+00> : vector<2x8xf32>
    %91 = vector.multi_reduction <add>, %90, %cst_38 [2] : vector<2x8x8xf32> to vector<2x8xf32>
    %92 = vector.shape_cast %91 : vector<2x8xf32> to vector<2x8x1xf32>
    %93 = tpu.reciprocal %92 {approx = true} : vector<2x8x1xf32> -> vector<2x8x1xf32>
    %94 = vector.broadcast %93 : vector<2x8x1xf32> to vector<2x8x8xf32>
    %95 = arith.mulf %90, %94 : vector<2x8x8xf32>
    "tpu.trace_start"() <{level = 10 : i32, message = "bqk,bkd->bqd"}> : () -> ()
    %cst_39 = arith.constant dense<0.000000e+00> : vector<2x8x8xf32>
    %96 = tpu.matmul %95, %81, %cst_39 {dimension_numbers = #tpu.dot_dimension_numbers<[2], [1], [1], [2], [0, 0, 0, 1, 1, 2], [0], [0]>} : vector<2x8x8xf32>, vector<2x8x8xf32>, vector<2x8x8xf32> -> vector<2x8x8xf32>
    "tpu.trace_stop"() : () -> ()
    %97 = tpu.concatenate %42, %60, %78, %96 in 2 : vector<2x8x8xf32>, vector<2x8x8xf32>, vector<2x8x8xf32>, vector<2x8x8xf32> -> vector<2x8x32xf32>
    %98 = vector.shape_cast %97 : vector<2x8x32xf32> to vector<16x32xf32>
    %99 = arith.truncf %98 : vector<16x32xf32> to vector<16x32xbf16>
    %cst_40 = arith.constant dense<0.000000e+00> : vector<16x32xf32>
    %100 = tpu.matmul %99, %21, %cst_40 {dimension_numbers = #tpu.dot_dimension_numbers<[1], [0], [0], [1], [0, 0, 1, 1], [], []>} : vector<16x32xbf16>, vector<32x32xbf16>, vector<16x32xf32> -> vector<16x32xf32>
    %101 = arith.addf %100, %3 : vector<16x32xf32>
    %cst_41 = arith.constant dense<0.000000e+00> : vector<16xf32>
    %102 = vector.multi_reduction <add>, %101, %cst_41 [1] : vector<16x32xf32> to vector<16xf32>
    %103 = vector.shape_cast %102 : vector<16xf32> to vector<16x1xf32>
    %cst_42 = arith.constant 3.200000e+01 : f32
    %104 = vector.broadcast %cst_42 : f32 to vector<16x1xf32>
    %105 = arith.divf %103, %104 : vector<16x1xf32>
    %106 = vector.broadcast %105 : vector<16x1xf32> to vector<16x32xf32>
    %107 = arith.subf %101, %106 : vector<16x32xf32>
    %108 = arith.mulf %107, %107 : vector<16x32xf32>
    %cst_43 = arith.constant dense<0.000000e+00> : vector<16xf32>
    %109 = vector.multi_reduction <add>, %108, %cst_43 [1] : vector<16x32xf32> to vector<16xf32>
    %110 = vector.shape_cast %109 : vector<16xf32> to vector<16x1xf32>
    %cst_44 = arith.constant 3.200000e+01 : f32
    %111 = vector.broadcast %cst_44 : f32 to vector<16x1xf32>
    %112 = arith.divf %110, %111 : vector<16x1xf32>
    %113 = vector.broadcast %105 : vector<16x1xf32> to vector<16x32xf32>
    %114 = arith.subf %101, %113 : vector<16x32xf32>
    %cst_45 = arith.constant 9.99999997E-7 : f32
    %115 = vector.broadcast %cst_45 : f32 to vector<16x1xf32>
    %116 = arith.addf %112, %115 : vector<16x1xf32>
    %117 = math.rsqrt %116 : vector<16x1xf32>
    %118 = vector.broadcast %117 : vector<16x1xf32> to vector<16x32xf32>
    %119 = arith.mulf %114, %118 : vector<16x32xf32>
    %120 = vector.broadcast %8 : vector<1x32xf32> to vector<16x32xf32>
    %121 = arith.mulf %119, %120 : vector<16x32xf32>
    %122 = vector.broadcast %9 : vector<1x32xf32> to vector<16x32xf32>
    %123 = arith.addf %121, %122 : vector<16x32xf32>
    %c0_46 = arith.constant 0 : index
    %c0_47 = arith.constant 0 : index
    %c0_48 = arith.constant 0 : index
    %124 = vector.load %arg9[%c0_46, %c0_47, %c0_48] : memref<1x32x32xbf16, #tpu.memory_space<vmem>>, vector<1x32x32xbf16>
    %125 = vector.shape_cast %124 : vector<1x32x32xbf16> to vector<32x32xbf16>
    %c0_49 = arith.constant 0 : index
    %c0_50 = arith.constant 0 : index
    %c0_51 = arith.constant 0 : index
    %126 = vector.load %arg10[%c0_49, %c0_50, %c0_51] : memref<1x32x64xbf16, #tpu.memory_space<vmem>>, vector<1x32x64xbf16>
    %127 = vector.shape_cast %126 : vector<1x32x64xbf16> to vector<32x64xbf16>
    %c0_52 = arith.constant 0 : index
    %c0_53 = arith.constant 0 : index
    %c0_54 = arith.constant 0 : index
    %128 = vector.load %arg11[%c0_52, %c0_53, %c0_54] : memref<1x32x32xbf16, #tpu.memory_space<vmem>>, vector<1x32x32xbf16>
    %129 = vector.shape_cast %128 : vector<1x32x32xbf16> to vector<32x32xbf16>
    %130 = arith.truncf %123 : vector<16x32xf32> to vector<16x32xbf16>
    %cst_55 = arith.constant dense<0.000000e+00> : vector<16x32xf32>
    %131 = tpu.matmul %130, %125, %cst_55 {dimension_numbers = #tpu.dot_dimension_numbers<[1], [0], [0], [1], [0, 0, 1, 1], [], []>} : vector<16x32xbf16>, vector<32x32xbf16>, vector<16x32xf32> -> vector<16x32xf32>
    %132 = arith.truncf %5 : vector<16x32xf32> to vector<16x32xbf16>
    %cst_56 = arith.constant dense<0.000000e+00> : vector<16x64xf32>
    %133 = tpu.matmul %132, %127, %cst_56 {dimension_numbers = #tpu.dot_dimension_numbers<[1], [0], [0], [1], [0, 0, 1, 1], [], []>} : vector<16x32xbf16>, vector<32x64xbf16>, vector<16x64xf32> -> vector<16x64xf32>
    %134 = vector.shape_cast %131 : vector<16x32xf32> to vector<2x8x32xf32>
    %135 = vector.shape_cast %133 : vector<16x64xf32> to vector<2x8x64xf32>
    %136 = vector.extract_strided_slice %134 {offsets = [0, 0, 0], sizes = [2, 8, 8], strides = [1, 1, 1]} : vector<2x8x32xf32> to vector<2x8x8xf32>
    %137 = vector.extract_strided_slice %135 {offsets = [0, 0, 0], sizes = [2, 8, 8], strides = [1, 1, 1]} : vector<2x8x64xf32> to vector<2x8x8xf32>
    %138 = vector.extract_strided_slice %135 {offsets = [0, 0, 8], sizes = [2, 8, 8], strides = [1, 1, 1]} : vector<2x8x64xf32> to vector<2x8x8xf32>
    "tpu.trace_start"() <{level = 10 : i32, message = "bqd,bkd->bqk"}> : () -> ()
    %cst_57 = arith.constant dense<0.000000e+00> : vector<2x8x8xf32>
    %139 = tpu.matmul %136, %137, %cst_57 {dimension_numbers = #tpu.dot_dimension_numbers<[2], [2], [1], [1], [0, 0, 0, 1, 1, 1], [0], [0]>} : vector<2x8x8xf32>, vector<2x8x8xf32>, vector<2x8x8xf32> -> vector<2x8x8xf32>
    "tpu.trace_stop"() : () -> ()
    %cst_58 = arith.constant 0.353553385 : f32
    %140 = vector.broadcast %cst_58 : f32 to vector<2x8x8xf32>
    %141 = arith.mulf %139, %140 : vector<2x8x8xf32>
    %142 = vector.broadcast %17 : vector<2x1x8xf32> to vector<2x8x8xf32>
    %143 = arith.addf %141, %142 : vector<2x8x8xf32>
    %cst_59 = arith.constant dense<0xFF800000> : vector<2x8xf32>
    %144 = vector.multi_reduction <maximumf>, %143, %cst_59 [2] : vector<2x8x8xf32> to vector<2x8xf32>
    %145 = vector.shape_cast %144 : vector<2x8xf32> to vector<2x8x1xf32>
    %146 = vector.broadcast %145 : vector<2x8x1xf32> to vector<2x8x8xf32>
    %147 = arith.subf %143, %146 : vector<2x8x8xf32>
    %148 = math.exp %147 : vector<2x8x8xf32>
    %cst_60 = arith.constant dense<0.000000e+00> : vector<2x8xf32>
    %149 = vector.multi_reduction <add>, %148, %cst_60 [2] : vector<2x8x8xf32> to vector<2x8xf32>
    %150 = vector.shape_cast %149 : vector<2x8xf32> to vector<2x8x1xf32>
    %151 = tpu.reciprocal %150 {approx = true} : vector<2x8x1xf32> -> vector<2x8x1xf32>
    %152 = vector.broadcast %151 : vector<2x8x1xf32> to vector<2x8x8xf32>
    %153 = arith.mulf %148, %152 : vector<2x8x8xf32>
    "tpu.trace_start"() <{level = 10 : i32, message = "bqk,bkd->bqd"}> : () -> ()
    %cst_61 = arith.constant dense<0.000000e+00> : vector<2x8x8xf32>
    %154 = tpu.matmul %153, %138, %cst_61 {dimension_numbers = #tpu.dot_dimension_numbers<[2], [1], [1], [2], [0, 0, 0, 1, 1, 2], [0], [0]>} : vector<2x8x8xf32>, vector<2x8x8xf32>, vector<2x8x8xf32> -> vector<2x8x8xf32>
    "tpu.trace_stop"() : () -> ()
    %155 = vector.extract_strided_slice %134 {offsets = [0, 0, 8], sizes = [2, 8, 8], strides = [1, 1, 1]} : vector<2x8x32xf32> to vector<2x8x8xf32>
    %156 = vector.extract_strided_slice %135 {offsets = [0, 0, 16], sizes = [2, 8, 8], strides = [1, 1, 1]} : vector<2x8x64xf32> to vector<2x8x8xf32>
    %157 = vector.extract_strided_slice %135 {offsets = [0, 0, 24], sizes = [2, 8, 8], strides = [1, 1, 1]} : vector<2x8x64xf32> to vector<2x8x8xf32>
    "tpu.trace_start"() <{level = 10 : i32, message = "bqd,bkd->bqk"}> : () -> ()
    %cst_62 = arith.constant dense<0.000000e+00> : vector<2x8x8xf32>
    %158 = tpu.matmul %155, %156, %cst_62 {dimension_numbers = #tpu.dot_dimension_numbers<[2], [2], [1], [1], [0, 0, 0, 1, 1, 1], [0], [0]>} : vector<2x8x8xf32>, vector<2x8x8xf32>, vector<2x8x8xf32> -> vector<2x8x8xf32>
    "tpu.trace_stop"() : () -> ()
    %cst_63 = arith.constant 0.353553385 : f32
    %159 = vector.broadcast %cst_63 : f32 to vector<2x8x8xf32>
    %160 = arith.mulf %158, %159 : vector<2x8x8xf32>
    %161 = vector.broadcast %17 : vector<2x1x8xf32> to vector<2x8x8xf32>
    %162 = arith.addf %160, %161 : vector<2x8x8xf32>
    %cst_64 = arith.constant dense<0xFF800000> : vector<2x8xf32>
    %163 = vector.multi_reduction <maximumf>, %162, %cst_64 [2] : vector<2x8x8xf32> to vector<2x8xf32>
    %164 = vector.shape_cast %163 : vector<2x8xf32> to vector<2x8x1xf32>
    %165 = vector.broadcast %164 : vector<2x8x1xf32> to vector<2x8x8xf32>
    %166 = arith.subf %162, %165 : vector<2x8x8xf32>
    %167 = math.exp %166 : vector<2x8x8xf32>
    %cst_65 = arith.constant dense<0.000000e+00> : vector<2x8xf32>
    %168 = vector.multi_reduction <add>, %167, %cst_65 [2] : vector<2x8x8xf32> to vector<2x8xf32>
    %169 = vector.shape_cast %168 : vector<2x8xf32> to vector<2x8x1xf32>
    %170 = tpu.reciprocal %169 {approx = true} : vector<2x8x1xf32> -> vector<2x8x1xf32>
    %171 = vector.broadcast %170 : vector<2x8x1xf32> to vector<2x8x8xf32>
    %172 = arith.mulf %167, %171 : vector<2x8x8xf32>
    "tpu.trace_start"() <{level = 10 : i32, message = "bqk,bkd->bqd"}> : () -> ()
    %cst_66 = arith.constant dense<0.000000e+00> : vector<2x8x8xf32>
    %173 = tpu.matmul %172, %157, %cst_66 {dimension_numbers = #tpu.dot_dimension_numbers<[2], [1], [1], [2], [0, 0, 0, 1, 1, 2], [0], [0]>} : vector<2x8x8xf32>, vector<2x8x8xf32>, vector<2x8x8xf32> -> vector<2x8x8xf32>
    "tpu.trace_stop"() : () -> ()
    %174 = vector.extract_strided_slice %134 {offsets = [0, 0, 16], sizes = [2, 8, 8], strides = [1, 1, 1]} : vector<2x8x32xf32> to vector<2x8x8xf32>
    %175 = vector.extract_strided_slice %135 {offsets = [0, 0, 32], sizes = [2, 8, 8], strides = [1, 1, 1]} : vector<2x8x64xf32> to vector<2x8x8xf32>
    %176 = vector.extract_strided_slice %135 {offsets = [0, 0, 40], sizes = [2, 8, 8], strides = [1, 1, 1]} : vector<2x8x64xf32> to vector<2x8x8xf32>
    "tpu.trace_start"() <{level = 10 : i32, message = "bqd,bkd->bqk"}> : () -> ()
    %cst_67 = arith.constant dense<0.000000e+00> : vector<2x8x8xf32>
    %177 = tpu.matmul %174, %175, %cst_67 {dimension_numbers = #tpu.dot_dimension_numbers<[2], [2], [1], [1], [0, 0, 0, 1, 1, 1], [0], [0]>} : vector<2x8x8xf32>, vector<2x8x8xf32>, vector<2x8x8xf32> -> vector<2x8x8xf32>
    "tpu.trace_stop"() : () -> ()
    %cst_68 = arith.constant 0.353553385 : f32
    %178 = vector.broadcast %cst_68 : f32 to vector<2x8x8xf32>
    %179 = arith.mulf %177, %178 : vector<2x8x8xf32>
    %180 = vector.broadcast %17 : vector<2x1x8xf32> to vector<2x8x8xf32>
    %181 = arith.addf %179, %180 : vector<2x8x8xf32>
    %cst_69 = arith.constant dense<0xFF800000> : vector<2x8xf32>
    %182 = vector.multi_reduction <maximumf>, %181, %cst_69 [2] : vector<2x8x8xf32> to vector<2x8xf32>
    %183 = vector.shape_cast %182 : vector<2x8xf32> to vector<2x8x1xf32>
    %184 = vector.broadcast %183 : vector<2x8x1xf32> to vector<2x8x8xf32>
    %185 = arith.subf %181, %184 : vector<2x8x8xf32>
    %186 = math.exp %185 : vector<2x8x8xf32>
    %cst_70 = arith.constant dense<0.000000e+00> : vector<2x8xf32>
    %187 = vector.multi_reduction <add>, %186, %cst_70 [2] : vector<2x8x8xf32> to vector<2x8xf32>
    %188 = vector.shape_cast %187 : vector<2x8xf32> to vector<2x8x1xf32>
    %189 = tpu.reciprocal %188 {approx = true} : vector<2x8x1xf32> -> vector<2x8x1xf32>
    %190 = vector.broadcast %189 : vector<2x8x1xf32> to vector<2x8x8xf32>
    %191 = arith.mulf %186, %190 : vector<2x8x8xf32>
    "tpu.trace_start"() <{level = 10 : i32, message = "bqk,bkd->bqd"}> : () -> ()
    %cst_71 = arith.constant dense<0.000000e+00> : vector<2x8x8xf32>
    %192 = tpu.matmul %191, %176, %cst_71 {dimension_numbers = #tpu.dot_dimension_numbers<[2], [1], [1], [2], [0, 0, 0, 1, 1, 2], [0], [0]>} : vector<2x8x8xf32>, vector<2x8x8xf32>, vector<2x8x8xf32> -> vector<2x8x8xf32>
    "tpu.trace_stop"() : () -> ()
    %193 = vector.extract_strided_slice %134 {offsets = [0, 0, 24], sizes = [2, 8, 8], strides = [1, 1, 1]} : vector<2x8x32xf32> to vector<2x8x8xf32>
    %194 = vector.extract_strided_slice %135 {offsets = [0, 0, 48], sizes = [2, 8, 8], strides = [1, 1, 1]} : vector<2x8x64xf32> to vector<2x8x8xf32>
    %195 = vector.extract_strided_slice %135 {offsets = [0, 0, 56], sizes = [2, 8, 8], strides = [1, 1, 1]} : vector<2x8x64xf32> to vector<2x8x8xf32>
    "tpu.trace_start"() <{level = 10 : i32, message = "bqd,bkd->bqk"}> : () -> ()
    %cst_72 = arith.constant dense<0.000000e+00> : vector<2x8x8xf32>
    %196 = tpu.matmul %193, %194, %cst_72 {dimension_numbers = #tpu.dot_dimension_numbers<[2], [2], [1], [1], [0, 0, 0, 1, 1, 1], [0], [0]>} : vector<2x8x8xf32>, vector<2x8x8xf32>, vector<2x8x8xf32> -> vector<2x8x8xf32>
    "tpu.trace_stop"() : () -> ()
    %cst_73 = arith.constant 0.353553385 : f32
    %197 = vector.broadcast %cst_73 : f32 to vector<2x8x8xf32>
    %198 = arith.mulf %196, %197 : vector<2x8x8xf32>
    %199 = vector.broadcast %17 : vector<2x1x8xf32> to vector<2x8x8xf32>
    %200 = arith.addf %198, %199 : vector<2x8x8xf32>
    %cst_74 = arith.constant dense<0xFF800000> : vector<2x8xf32>
    %201 = vector.multi_reduction <maximumf>, %200, %cst_74 [2] : vector<2x8x8xf32> to vector<2x8xf32>
    %202 = vector.shape_cast %201 : vector<2x8xf32> to vector<2x8x1xf32>
    %203 = vector.broadcast %202 : vector<2x8x1xf32> to vector<2x8x8xf32>
    %204 = arith.subf %200, %203 : vector<2x8x8xf32>
    %205 = math.exp %204 : vector<2x8x8xf32>
    %cst_75 = arith.constant dense<0.000000e+00> : vector<2x8xf32>
    %206 = vector.multi_reduction <add>, %205, %cst_75 [2] : vector<2x8x8xf32> to vector<2x8xf32>
    %207 = vector.shape_cast %206 : vector<2x8xf32> to vector<2x8x1xf32>
    %208 = tpu.reciprocal %207 {approx = true} : vector<2x8x1xf32> -> vector<2x8x1xf32>
    %209 = vector.broadcast %208 : vector<2x8x1xf32> to vector<2x8x8xf32>
    %210 = arith.mulf %205, %209 : vector<2x8x8xf32>
    "tpu.trace_start"() <{level = 10 : i32, message = "bqk,bkd->bqd"}> : () -> ()
    %cst_76 = arith.constant dense<0.000000e+00> : vector<2x8x8xf32>
    %211 = tpu.matmul %210, %195, %cst_76 {dimension_numbers = #tpu.dot_dimension_numbers<[2], [1], [1], [2], [0, 0, 0, 1, 1, 2], [0], [0]>} : vector<2x8x8xf32>, vector<2x8x8xf32>, vector<2x8x8xf32> -> vector<2x8x8xf32>
    "tpu.trace_stop"() : () -> ()
    %212 = tpu.concatenate %154, %173, %192, %211 in 2 : vector<2x8x8xf32>, vector<2x8x8xf32>, vector<2x8x8xf32>, vector<2x8x8xf32> -> vector<2x8x32xf32>
    %213 = vector.shape_cast %212 : vector<2x8x32xf32> to vector<16x32xf32>
    %214 = arith.truncf %213 : vector<16x32xf32> to vector<16x32xbf16>
    %cst_77 = arith.constant dense<0.000000e+00> : vector<16x32xf32>
    %215 = tpu.matmul %214, %129, %cst_77 {dimension_numbers = #tpu.dot_dimension_numbers<[1], [0], [0], [1], [0, 0, 1, 1], [], []>} : vector<16x32xbf16>, vector<32x32xbf16>, vector<16x32xf32> -> vector<16x32xf32>
    %216 = arith.addf %215, %123 : vector<16x32xf32>
    %cst_78 = arith.constant dense<0.000000e+00> : vector<16xf32>
    %217 = vector.multi_reduction <add>, %216, %cst_78 [1] : vector<16x32xf32> to vector<16xf32>
    %218 = vector.shape_cast %217 : vector<16xf32> to vector<16x1xf32>
    %cst_79 = arith.constant 3.200000e+01 : f32
    %219 = vector.broadcast %cst_79 : f32 to vector<16x1xf32>
    %220 = arith.divf %218, %219 : vector<16x1xf32>
    %221 = vector.broadcast %220 : vector<16x1xf32> to vector<16x32xf32>
    %222 = arith.subf %216, %221 : vector<16x32xf32>
    %223 = arith.mulf %222, %222 : vector<16x32xf32>
    %cst_80 = arith.constant dense<0.000000e+00> : vector<16xf32>
    %224 = vector.multi_reduction <add>, %223, %cst_80 [1] : vector<16x32xf32> to vector<16xf32>
    %225 = vector.shape_cast %224 : vector<16xf32> to vector<16x1xf32>
    %cst_81 = arith.constant 3.200000e+01 : f32
    %226 = vector.broadcast %cst_81 : f32 to vector<16x1xf32>
    %227 = arith.divf %225, %226 : vector<16x1xf32>
    %228 = vector.broadcast %220 : vector<16x1xf32> to vector<16x32xf32>
    %229 = arith.subf %216, %228 : vector<16x32xf32>
    %cst_82 = arith.constant 9.99999997E-7 : f32
    %230 = vector.broadcast %cst_82 : f32 to vector<16x1xf32>
    %231 = arith.addf %227, %230 : vector<16x1xf32>
    %232 = math.rsqrt %231 : vector<16x1xf32>
    %233 = vector.broadcast %232 : vector<16x1xf32> to vector<16x32xf32>
    %234 = arith.mulf %229, %233 : vector<16x32xf32>
    %235 = vector.broadcast %10 : vector<1x32xf32> to vector<16x32xf32>
    %236 = arith.mulf %234, %235 : vector<16x32xf32>
    %237 = vector.broadcast %11 : vector<1x32xf32> to vector<16x32xf32>
    %238 = arith.addf %236, %237 : vector<16x32xf32>
    %c0_83 = arith.constant 0 : index
    %c0_84 = arith.constant 0 : index
    %c0_85 = arith.constant 0 : index
    %239 = vector.load %arg12[%c0_83, %c0_84, %c0_85] : memref<1x32x64xbf16, #tpu.memory_space<vmem>>, vector<1x32x64xbf16>
    %240 = vector.shape_cast %239 : vector<1x32x64xbf16> to vector<32x64xbf16>
    %c0_86 = arith.constant 0 : index
    %c0_87 = arith.constant 0 : index
    %c0_88 = arith.constant 0 : index
    %241 = vector.load %arg13[%c0_86, %c0_87, %c0_88] : memref<1x64x32xbf16, #tpu.memory_space<vmem>>, vector<1x64x32xbf16>
    %242 = vector.shape_cast %241 : vector<1x64x32xbf16> to vector<64x32xbf16>
    %243 = arith.truncf %238 : vector<16x32xf32> to vector<16x32xbf16>
    %cst_89 = arith.constant dense<0.000000e+00> : vector<16x64xf32>
    %244 = tpu.matmul %243, %240, %cst_89 {dimension_numbers = #tpu.dot_dimension_numbers<[1], [0], [0], [1], [0, 0, 1, 1], [], []>} : vector<16x32xbf16>, vector<32x64xbf16>, vector<16x64xf32> -> vector<16x64xf32>
    %245 = vector.broadcast %14 : vector<1x64xf32> to vector<16x64xf32>
    %246 = arith.addf %244, %245 : vector<16x64xf32>
    %cst_90 = arith.constant 0.000000e+00 : f32
    %247 = vector.broadcast %cst_90 : f32 to vector<16x64xf32>
    %248 = arith.maximumf %246, %247 : vector<16x64xf32>
    %249 = arith.truncf %248 : vector<16x64xf32> to vector<16x64xbf16>
    %cst_91 = arith.constant dense<0.000000e+00> : vector<16x32xf32>
    %250 = tpu.matmul %249, %242, %cst_91 {dimension_numbers = #tpu.dot_dimension_numbers<[1], [0], [0], [1], [0, 0, 1, 1], [], []>} : vector<16x64xbf16>, vector<64x32xbf16>, vector<16x32xf32> -> vector<16x32xf32>
    %251 = vector.broadcast %15 : vector<1x32xf32> to vector<16x32xf32>
    %252 = arith.addf %250, %251 : vector<16x32xf32>
    %253 = arith.addf %252, %238 : vector<16x32xf32>
    %cst_92 = arith.constant dense<0.000000e+00> : vector<16xf32>
    %254 = vector.multi_reduction <add>, %253, %cst_92 [1] : vector<16x32xf32> to vector<16xf32>
    %255 = vector.shape_cast %254 : vector<16xf32> to vector<16x1xf32>
    %cst_93 = arith.constant 3.200000e+01 : f32
    %256 = vector.broadcast %cst_93 : f32 to vector<16x1xf32>
    %257 = arith.divf %255, %256 : vector<16x1xf32>
    %258 = vector.broadcast %257 : vector<16x1xf32> to vector<16x32xf32>
    %259 = arith.subf %253, %258 : vector<16x32xf32>
    %260 = arith.mulf %259, %259 : vector<16x32xf32>
    %cst_94 = arith.constant dense<0.000000e+00> : vector<16xf32>
    %261 = vector.multi_reduction <add>, %260, %cst_94 [1] : vector<16x32xf32> to vector<16xf32>
    %262 = vector.shape_cast %261 : vector<16xf32> to vector<16x1xf32>
    %cst_95 = arith.constant 3.200000e+01 : f32
    %263 = vector.broadcast %cst_95 : f32 to vector<16x1xf32>
    %264 = arith.divf %262, %263 : vector<16x1xf32>
    %265 = vector.broadcast %257 : vector<16x1xf32> to vector<16x32xf32>
    %266 = arith.subf %253, %265 : vector<16x32xf32>
    %cst_96 = arith.constant 9.99999997E-7 : f32
    %267 = vector.broadcast %cst_96 : f32 to vector<16x1xf32>
    %268 = arith.addf %264, %267 : vector<16x1xf32>
    %269 = math.rsqrt %268 : vector<16x1xf32>
    %270 = vector.broadcast %269 : vector<16x1xf32> to vector<16x32xf32>
    %271 = arith.mulf %266, %270 : vector<16x32xf32>
    %272 = vector.broadcast %12 : vector<1x32xf32> to vector<16x32xf32>
    %273 = arith.mulf %271, %272 : vector<16x32xf32>
    %274 = vector.broadcast %13 : vector<1x32xf32> to vector<16x32xf32>
    %275 = arith.addf %273, %274 : vector<16x32xf32>
    %c0_97 = arith.constant 0 : index
    %c0_98 = arith.constant 0 : index
    %276 = vector.load %arg16[%c0_97, %c0_98] : memref<16x32xf32, #tpu.memory_space<vmem>>, vector<16x32xf32>
    tpu.vector_store %arg16[%c0_97, %c0_98], %275 {strides = array<i32>} : memref<16x32xf32, #tpu.memory_space<vmem>>, vector<16x32xf32>,
    %c1_i32 = arith.constant 1 : i32
    %277 = arith.cmpi eq, %arg0, %c1_i32 : i32
    %278 = arith.extui %277 : i1 to i32
    %c0_i32_99 = arith.constant 0 : i32
    %279 = arith.cmpi ne, %278, %c0_i32_99 : i32
    scf.if %279 {
      %c0_100 = arith.constant 0 : index
      %c0_101 = arith.constant 0 : index
      %280 = vector.load %arg15[%c0_100, %c0_101] : memref<16x32xf32, #tpu.memory_space<vmem>>, vector<16x32xf32>
      tpu.vector_store %arg15[%c0_100, %c0_101], %275 {strides = array<i32>} : memref<16x32xf32, #tpu.memory_space<vmem>>, vector<16x32xf32>,
    } else {
    }
    return
  }
  func.func @transform_0(%arg0: i32) -> (i32, i32, i32) {
    %c0_i32 = arith.constant 0 : i32
    %c0_i32_0 = arith.constant 0 : i32
    %c0_i32_1 = arith.constant 0 : i32
    %c0_i32_2 = arith.constant 0 : i32
    return %c0_i32, %c0_i32_0, %c0_i32_1 : i32, i32, i32
  }
  func.func @transform_1(%arg0: i32) -> (i32, i32) {
    %c0_i32 = arith.constant 0 : i32
    %c0_i32_0 = arith.constant 0 : i32
    %c0_i32_1 = arith.constant 0 : i32
    return %c0_i32, %c0_i32_0 : i32, i32
  }
  func.func @transform_2(%arg0: i32) -> (i32, i32) {
    %c0_i32 = arith.constant 0 : i32
    %c0_i32_0 = arith.constant 0 : i32
    %c0_i32_1 = arith.constant 0 : i32
    return %c0_i32, %c0_i32_0 : i32, i32
  }
  func.func @transform_3(%arg0: i32) -> (i32, i32, i32) {
    %c0_i32 = arith.constant 0 : i32
    %c0_i32_0 = arith.constant 0 : i32
    %c0_i32_1 = arith.constant 0 : i32
    %c0_i32_2 = arith.constant 0 : i32
    return %c0_i32, %c0_i32_0, %c0_i32_1 : i32, i32, i32
  }
  func.func @transform_4(%arg0: i32) -> (i32, i32, i32) {
    %c0_i32 = arith.constant 0 : i32
    %c0_i32_0 = arith.constant 0 : i32
    %c0_i32_1 = arith.constant 0 : i32
    %c0_i32_2 = arith.constant 0 : i32
    return %c0_i32, %c0_i32_0, %c0_i32_1 : i32, i32, i32
  }
  func.func @transform_5(%arg0: i32) -> (i32, i32, i32) {
    %c0_i32 = arith.constant 0 : i32
    %c0_i32_0 = arith.constant 0 : i32
    %c0_i32_1 = arith.constant 0 : i32
    %c0_i32_2 = arith.constant 0 : i32
    return %c0_i32, %c0_i32_0, %c0_i32_1 : i32, i32, i32
  }
  func.func @transform_6(%arg0: i32) -> (i32, i32, i32) {
    %c0_i32 = arith.constant 0 : i32
    %c0_i32_0 = arith.constant 0 : i32
    %c0_i32_1 = arith.constant 0 : i32
    return %arg0, %c0_i32, %c0_i32_0 : i32, i32, i32
  }
  func.func @transform_7(%arg0: i32) -> (i32, i32, i32) {
    %c0_i32 = arith.constant 0 : i32
    %c0_i32_0 = arith.constant 0 : i32
    %c0_i32_1 = arith.constant 0 : i32
    return %arg0, %c0_i32, %c0_i32_0 : i32, i32, i32
  }
  func.func @transform_8(%arg0: i32) -> (i32, i32, i32) {
    %c0_i32 = arith.constant 0 : i32
    %c0_i32_0 = arith.constant 0 : i32
    %c0_i32_1 = arith.constant 0 : i32
    return %arg0, %c0_i32, %c0_i32_0 : i32, i32, i32
  }
  func.func @transform_9(%arg0: i32) -> (i32, i32, i32) {
    %c0_i32 = arith.constant 0 : i32
    %c0_i32_0 = arith.constant 0 : i32
    %c0_i32_1 = arith.constant 0 : i32
    return %arg0, %c0_i32, %c0_i32_0 : i32, i32, i32
  }
  func.func @transform_10(%arg0: i32) -> (i32, i32, i32) {
    %c0_i32 = arith.constant 0 : i32
    %c0_i32_0 = arith.constant 0 : i32
    %c0_i32_1 = arith.constant 0 : i32
    return %arg0, %c0_i32, %c0_i32_0 : i32, i32, i32
  }
  func.func @transform_11(%arg0: i32) -> (i32, i32, i32) {
    %c0_i32 = arith.constant 0 : i32
    %c0_i32_0 = arith.constant 0 : i32
    %c0_i32_1 = arith.constant 0 : i32
    return %arg0, %c0_i32, %c0_i32_0 : i32, i32, i32
  }
  func.func @transform_12(%arg0: i32) -> (i32, i32, i32) {
    %c0_i32 = arith.constant 0 : i32
    %c0_i32_0 = arith.constant 0 : i32
    %c0_i32_1 = arith.constant 0 : i32
    return %arg0, %c0_i32, %c0_i32_0 : i32, i32, i32
  }
  func.func @transform_13(%arg0: i32) -> (i32, i32, i32) {
    %c0_i32 = arith.constant 0 : i32
    %c0_i32_0 = arith.constant 0 : i32
    %c0_i32_1 = arith.constant 0 : i32
    return %arg0, %c0_i32, %c0_i32_0 : i32, i32, i32
  }
  func.func @transform_14(%arg0: i32) -> (i32, i32) {
    %c0_i32 = arith.constant 0 : i32
    %c0_i32_0 = arith.constant 0 : i32
    %c0_i32_1 = arith.constant 0 : i32
    return %c0_i32, %c0_i32_0 : i32, i32
  }
}

</mosaic_0001>

<bundles_post_ra>
// kernel: tpu_custom_call.1
= control target key start
LH: loop header
LB: loop body
LE: loop exit
PB: predicated region body
PF: predicated region fallthrough
CT: control target
= control target key end

     0   :  { %s6338_s0 = inlined_call_operand.hbm [shape: f32[2,8,32], index: 0, kind: input, shape index: {}]   ;;  %s6339_s1 = inlined_call_operand.hbm [shape: f32[8,32], index: 1, kind: input, shape index: {}]   ;;  %s6340_s2 = inlined_call_operand.hbm [shape: f32[2,32], index: 2, kind: input, shape index: {}]   ;;  %s6341_s3 = inlined_call_operand.hbm [shape: f32[2,8,32], index: 3, kind: input, shape index: {}]   ;;  %s6342_s4 = inlined_call_operand.hbm [shape: f32[2,8,8], index: 4, kind: input, shape index: {}]   ;;  %s6343_s5 = inlined_call_operand.hbm [shape: f32[2,1,8], index: 5, kind: input, shape index: {}]   ;;  %s6344_s6 = inlined_call_operand.vmem [shape: bf16[2,32,96], index: 6, kind: input, shape index: {}]   ;;  %s6345_s7 = inlined_call_operand.vmem [shape: bf16[2,32,32], index: 7, kind: input, shape index: {}]   ;;  %s6346_s8 = inlined_call_operand.vmem [shape: bf16[2,32,32], index: 8, kind: input, shape index: {}]   ;;  %s6347_s9 = inlined_call_operand.hbm [shape: bf16[2,32,64], index: 9, kind: input, shape index: {}]   ;;  %s6348_s10 = inlined_call_operand.hbm [shape: bf16[2,32,32], index: 10, kind: input, shape index: {}]   ;;  %s6349_s11 = inlined_call_operand.hbm [shape: bf16[2,32,64], index: 11, kind: input, shape index: {}]   ;;  %s6350_s12 = inlined_call_operand.vmem [shape: bf16[2,64,32], index: 12, kind: input, shape index: {}]   ;;  %s6351_s13 = inlined_call_operand.vmem [shape: f32[2,8,64], index: 13, kind: input, shape index: {}]   ;;  %s6352_s14 = inlined_call_operand.hbm [shape: f32[16,32], index: 14, kind: output, shape index: {}]  }
   0x1   :  { %6378 = sst [smem:[#allocation28_spill]] %s6338_s0 }
   0x2   :  { %6379 = sst [smem:[#allocation29_spill]] %s6339_s1 }
   0x3   :  { %6380 = sst [smem:[#allocation30_spill]] %s6341_s3 }
   0x4   :  { %6381 = sst [smem:[#allocation31_spill]] %s6344_s6 }
   0x5   :  { %6382 = sst [smem:[#allocation32_spill]] %s6345_s7 }
   0x6   :  { %6383 = sst [smem:[#allocation33_spill]] %s6346_s8 }
   0x7   :  { %6384 = sst [smem:[#allocation34_spill]] %s6347_s9 }
   0x8   :  { %6385 = sst [smem:[#allocation35_spill]] %s6350_s12 }
   0x9   :  { %6386 = sst [smem:[#allocation36_spill]] %s6351_s13 }
   0xa   :  { %6387 = sst [smem:[#allocation37_spill]] %s6352_s14 }
   0xb   :  { %19 = vsyncpa [#allocation4], 0 }
   0xc   :  { %20 = vsyncpa [#allocation7], 0 }
   0xd   :  { %21 = vsyncpa [#allocation10], 0 }
   0xe   :  { %22 = vsyncpa [#allocation13], 0 }
   0xf   :  { %23 = vsyncpa [#allocation5], 0  ;;  %s5469_s29 = smov 0   ;;  %s5471_s30 = smov 0  }
  0x10   :  { %s5473_s15 = smov 0   ;;  %s5475_s16 = smov 0  }
  0x11 LB: > { %6388 = sst [smem:[#allocation24_spill]] %s5355_s15  ;;  %s5361_s17 = smov [#allocation3]   ;;  %s5359_s16 = sphi %s5475_s16, %s6431_s16   ;;  %s5355_s15 = sphi %s5473_s15, %s6433_s15   ;;  %s5351_s30 = sphi %s5471_s30, %s6435_s30   ;;  %s5347_s29 = sphi %s5469_s29, %s6434_s29  }
  0x12   : > { %s401_s18 = sshll.u32 %s5361_s17, 4  ;;  %s5490_s19 = sadd.s32 4294967295, %s5359_s16   ;;  %s402_s18 = int_to_ptr.vmem [resolvable:$true] %s401_s18 }
  0x13   : > { %p4326_p0 = scmp.ge.s32.totalorder %s5359_s16, 1  ;;  %p6354_p1 = scmp.eq.s32.totalorder %s5490_s19, 0 }
  0x14   : > { %p389_p2 = scmp.lt.s32.totalorder %s5359_s16, 3  ;;  %s5509_s22 = sadd.s32 1, %s5359_s16  }
  0x15   : > { %6391 = sst [smem:[#allocation25_spill]] %s5509_s22  ;;  %s6392_s0 = sld [smem:[#allocation28_spill]] }
  0x16   : > { %p5496_p4 = pnand %p4326_p0, %p389_p2 }
  0x18   : > { %s6389_s20 = scalar_select %p5496_p4, 1, 0 }
  0x19   : > { %p4789_p5 = pneg %p5496_p4 }
  0x1b   : > { %p5504_p6 = pnand %p4789_p5, %p6354_p1  ;;  %s5021_s25 = scalar_lea.hbm %s6392_s0, 256 }
  0x1c   : > { %p5022_p7 = scmp.ne.s32.totalorder %s6392_s0, %s5021_s25  ;;  %p5028_p11 = scmp.lt.u32.totalorder %s5021_s25, %s6392_s0 }
  0x1d   : > { %s6390_s21 = scalar_select %p5504_p6, 1, 0 }
  0x1e   : > { %p5519_p8 = pneg %p5504_p6 }
  0x20   : > { %s6393_s28 = scalar_select %p5519_p8, 1, 0 }
  0x21   : > { %p5024_p9 = pnand %p5519_p8, %p5022_p7 }
  0x23   : > { %p5025_p10 = pneg %p5024_p9 }
  0x25   : > { %p5030_p12 = pnand %p5028_p11, %p5025_p10 }
  0x27   : > { %5033 = shalt.err (!%p5030_p12)
}
  0x28   : > { %s5034_s23 = scalar_lea.vmem %s402_s18, 256  ;;  %p5042_p5 = scmp.lt.s32.totalorder %s402_s18, %s402_s18 }
  0x29   : > { %p5035_p13 = scmp.ne.s32.totalorder %s402_s18, %s5034_s23  ;;  %p5043_p3 = scmp.lt.s32.totalorder %s5034_s23, %s5034_s23 }
  0x2b   : > { %p5037_p0 = pnand %p5035_p13, %p5519_p8  ;;  %p5044_p1 = por %p5043_p3, %p5042_p5 }
  0x2d   : > { %p5038_p2 = pneg %p5037_p0 }
  0x2f   : > { %p5045_p4 = pnand %p5044_p1, %p5038_p2 }
  0x31   : > { %5048 = shalt.err (!%p5045_p4)
}
  0x32   : > { %s6356_s24 = smov 128   ;;  %s6358_s14 = smov 8  }
  0x33   : > { %4792 = dma.hbm_to_vmem [thread:$0]  (!%p5504_p6), %s6392_s0, 256, %s402_s18, [#allocation4], %s6356_s24, %s6356_s24, %s6358_s14  }
  0x34   : > { %s237_s27 = ssub.s32 %s5359_s16, %s5509_s22  ;;  %s240_s17 = sadd.s32 1, %s5355_s15 }
  0x35   : > { %p238_p1 = scmp.eq.s32.totalorder %s237_s27, 0  ;;  %p247_p3 = scmp.ne.s32.totalorder %s5355_s15, %s5351_s30 }
  0x36   : > { %p248_p4 = scmp.eq.s32.totalorder %s5359_s16, 0  ;;  %p253_p7 = scmp.ne.s32.totalorder %s5351_s30, %s5347_s29 }
  0x37   : > { %s5547_s23 = scalar_select %p238_p1, %s5355_s15, %s240_s17  }
  0x38   : > { %p249_p9 = por %p248_p4, %p247_p3  ;;  %p6395_p10 = scmp.eq.s32.totalorder %s5490_s19, 0 }
  0x39   : > { %6394 = sst [smem:[#allocation26_spill]] %s5547_s23  ;;  %p4824_p12 = scmp.lt.s32.totalorder %s5359_s16, 2 }
  0x3a   : > { %p5551_p11 = por %p6395_p10, %p253_p7  ;;  %s500_s12 = sand.u32 1, %s5359_s16  }
  0x3b   : > { %s502_s8 = sand.u32 1, %s5355_s15   ;;  %s5561_s18 = sshll.u32 %s5359_s16, 8 }
  0x3c   : > { %s6396_s13 = scalar_select %p5551_p11, 1, 0 }
  0x3d   : > { %s5558_s7 = sshll.u32 %s502_s8, 4  ;;  %s6398_s9 = sld [smem:[#allocation34_spill]] }
  0x3e   : > { %6397 = sst [smem:[#allocation27_spill]] %s6396_s13  ;;  %s504_s27 = scalar_lea.vmem [#allocation14], %s5558_s7 }
  0x3f   : > { %s511_s17 = sshll.u32 %s504_s27, 4  ;;  %p5570_p13 = pnand %p4824_p12, %p249_p9  ;;  %s5574_s17 = int_to_ptr.vmem [resolvable:$true] %s511_s17 }
  0x40   : > { %s5576_s8 = scalar_lea.sflag [#allocation4], %s500_s12 }
  0x41   : > { %s6399_s24 = scalar_select %p5570_p13, 1, 0 }
  0x42   : > { %p5582_p2 = pneg %p5570_p13 }
  0x43   : > { %s5567_s29 = scalar_lea.hbm %s6398_s9, %s5561_s18  ;;  %s5054_s14 = scalar_lea.hbm %s6398_s9, 512 }
  0x44   : > { %s5049_s16 = scalar_lea.hbm %s5567_s29, 256  ;;  %p5055_p3 = scmp.lt.u32.totalorder %s5567_s29, %s6398_s9 }
  0x45   : > { %p5050_p0 = scmp.ne.s32.totalorder %s5567_s29, %s5049_s16  ;;  %p5056_p4 = scmp.lt.u32.totalorder %s5054_s14, %s5049_s16 }
  0x46   : > { %s6400_s25 = scalar_select %p5582_p2, 1, 0 }
  0x47   : > { %p5052_p5 = pnand %p5582_p2, %p5050_p0  ;;  %p5057_p7 = por %p5056_p4, %p5055_p3 }
  0x48   : > { %p5058_p9 = scmp.lt.u32.totalorder %s5049_s16, %s5567_s29 }
  0x49   : > { %p5053_p1 = pneg %p5052_p5 }
  0x4a   : > { %p5059_p10 = por %p5058_p9, %p5057_p7 }
  0x4c   : > { %p5060_p12 = pnand %p5059_p10, %p5053_p1 }
  0x4e   : > { %5063 = shalt.err (!%p5060_p12)
}
  0x4f   : > { %s5064_s12 = scalar_lea.vmem %s5574_s17, 256  ;;  %s5364_s26 = smov [#allocation14]  }
  0x50   : > { %p5065_p0 = scmp.ne.s32.totalorder %s5574_s17, %s5064_s12  ;;  %s5069_s27 = sshll.u32 %s5364_s26, 4  ;;  %s5070_s27 = int_to_ptr.vmem [resolvable:$false] %s5069_s27 }
  0x51   : > { %s5071_s0 = scalar_lea.vmem %s5070_s27, 512  ;;  %p5072_p6 = scmp.lt.s32.totalorder %s5574_s17, %s5070_s27 }
  0x52   : > { %p5067_p5 = pnand %p5065_p0, %p5582_p2  ;;  %p5073_p8 = scmp.lt.s32.totalorder %s5071_s0, %s5064_s12 }
  0x54   : > { %p5068_p11 = pneg %p5067_p5  ;;  %p5074_p3 = por %p5073_p8, %p5072_p6 }
  0x56   : > { %p5075_p4 = pnand %p5074_p3, %p5068_p11 }
  0x58   : > { %5078 = shalt.err (!%p5075_p4)
}
  0x59   : > { %s6372_s14 = smov 64   ;;  %s6375_s23 = smov 4  }
  0x5a   : > { %4811 = dma.hbm_to_vmem [thread:$0]  (!%p5570_p13), %s5567_s29, 256, %s5574_s17, %s5576_s8, %s6372_s14, %s6372_s14, %s6375_s23  }
  0x5b   : > { %s5367_s16 = smov [#allocation6]   ;;  %s5368_s9 = smov [#allocation9]  }
  0x5c   : > { %s415_s26 = sshll.u32 %s5367_s16, 4  ;;  %s436_s27 = sshll.u32 %s5368_s9, 4  ;;  %s416_s26 = int_to_ptr.vmem [resolvable:$true] %s415_s26  ;;  %s5609_s27 = int_to_ptr.vmem [resolvable:$true] %s436_s27 }
  0x5d   : > { %s6401_s1 = sld [smem:[#allocation29_spill]]  ;;  %p6402_p8 = scmp.ne.s32.totalorder %s6393_s28, 0 }
  0x63   : > { %s5079_s15 = scalar_lea.hbm %s6401_s1, 128 }
  0x64   : > { %p5080_p6 = scmp.ne.s32.totalorder %s6401_s1, %s5079_s15  ;;  %p5086_p7 = scmp.lt.u32.totalorder %s5079_s15, %s6401_s1 }
  0x66   : > { %p5082_p11 = pnand %p5080_p6, %p6402_p8 }
  0x68   : > { %p5083_p1 = pneg %p5082_p11 }
  0x6a   : > { %p5088_p9 = pnand %p5086_p7, %p5083_p1 }
  0x6c   : > { %5091 = shalt.err (!%p5088_p9)
}
  0x6d   : > { %s5092_s9 = scalar_lea.vmem %s416_s26, 128  ;;  %p5100_p5 = scmp.lt.s32.totalorder %s416_s26, %s416_s26 }
  0x6e   : > { %p5093_p10 = scmp.ne.s32.totalorder %s416_s26, %s5092_s9  ;;  %p5101_p3 = scmp.lt.s32.totalorder %s5092_s9, %s5092_s9 }
  0x70   : > { %p5095_p12 = pnand %p5093_p10, %p6402_p8  ;;  %p5102_p4 = por %p5101_p3, %p5100_p5 }
  0x72   : > { %p5096_p0 = pneg %p5095_p12 }
  0x74   : > { %p5103_p13 = pnand %p5102_p4, %p5096_p0 }
  0x76   : > { %5106 = shalt.err (!%p5103_p13)
}
  0x77   : > { %p6403_p6 = scmp.ne.s32.totalorder %s6390_s21, 0  ;;  %s6404_s3 = sld [smem:[#allocation30_spill]] }
  0x79   : > { %4795 = dma.hbm_to_vmem [thread:$0]  (!%p6403_p6), %s6401_s1, 128, %s416_s26, [#allocation7]  }
  0x7d   : > { %s5107_s17 = scalar_lea.hbm %s6404_s3, 256 }
  0x7e   : > { %p5108_p11 = scmp.ne.s32.totalorder %s6404_s3, %s5107_s17  ;;  %p5114_p13 = scmp.lt.u32.totalorder %s5107_s17, %s6404_s3 }
  0x80   : > { %p5110_p1 = pnand %p5108_p11, %p6402_p8 }
  0x82   : > { %p5111_p7 = pneg %p5110_p1 }
  0x84   : > { %p5116_p9 = pnand %p5114_p13, %p5111_p7 }
  0x86   : > { %5119 = shalt.err (!%p5116_p9)
}
  0x87   : > { %s5120_s26 = scalar_lea.vmem %s5609_s27, 256  ;;  %p5128_p5 = scmp.lt.s32.totalorder %s5609_s27, %s5609_s27 }
  0x88   : > { %p5121_p10 = scmp.ne.s32.totalorder %s5609_s27, %s5120_s26  ;;  %p5129_p3 = scmp.lt.s32.totalorder %s5120_s26, %s5120_s26 }
  0x8a   : > { %p5123_p12 = pnand %p5121_p10, %p6402_p8  ;;  %p5130_p4 = por %p5129_p3, %p5128_p5 }
  0x8c   : > { %p5124_p0 = pneg %p5123_p12 }
  0x8e   : > { %p5131_p11 = pnand %p5130_p4, %p5124_p0 }
  0x90   : > { %5134 = shalt.err (!%p5131_p11)
}
  0x91   : > { %s6405_s9 = smov 8   ;;  %s6406_s6 = smov 128  }
  0x92   : > { %4801 = dma.hbm_to_vmem [thread:$0]  (!%p6403_p6), %s6404_s3, 256, %s5609_s27, [#allocation10], %s6406_s6, %s6406_s6, %s6405_s9  }
  0x93   : > { %s5659_s16 = scalar_lea.hbm %s6348_s10, %s5561_s18  ;;  %s525_s12 = scalar_lea.vmem [#allocation15], %s5558_s7 }
  0x94   : > { %s532_s0 = sshll.u32 %s525_s12, 4  ;;  %s5369_s29 = smov [#allocation8]   ;;  %s5662_s0 = int_to_ptr.vmem [resolvable:$true] %s532_s0 }
  0x95   : > { %s5664_s26 = sshll.u32 %s5369_s29, 4  ;;  %s5135_s22 = scalar_lea.hbm %s5659_s16, 256  ;;  %s427_s26 = int_to_ptr.vmem [resolvable:$true] %s5664_s26 }
  0x96   : > { %p5136_p1 = scmp.ne.s32.totalorder %s5659_s16, %s5135_s22  ;;  %s5140_s15 = scalar_lea.hbm %s6348_s10, 512 }
  0x97   : > { %p5141_p9 = scmp.lt.u32.totalorder %s5659_s16, %s6348_s10  ;;  %p5142_p10 = scmp.lt.u32.totalorder %s5140_s15, %s5135_s22 }
  0x98   : > { %p5138_p7 = pnand %p5136_p1, %p5582_p2  ;;  %p5144_p0 = scmp.lt.u32.totalorder %s5135_s22, %s5659_s16 }
  0x99   : > { %p5143_p12 = por %p5142_p10, %p5141_p9 }
  0x9a   : > { %p5139_p13 = pneg %p5138_p7 }
  0x9b   : > { %p5145_p5 = por %p5144_p0, %p5143_p12 }
  0x9d   : > { %p5146_p3 = pnand %p5145_p5, %p5139_p13 }
  0x9f   : > { %5149 = shalt.err (!%p5146_p3)
}
  0xa0   : > { %s5150_s12 = scalar_lea.vmem %s5662_s0, 256  ;;  %s5370_s29 = smov [#allocation15]  }
  0xa1   : > { %p5151_p4 = scmp.ne.s32.totalorder %s5662_s0, %s5150_s12  ;;  %s5155_s27 = sshll.u32 %s5370_s29, 4  ;;  %s5156_s27 = int_to_ptr.vmem [resolvable:$false] %s5155_s27 }
  0xa2   : > { %s5157_s14 = scalar_lea.vmem %s5156_s27, 512  ;;  %p5158_p7 = scmp.lt.s32.totalorder %s5662_s0, %s5156_s27 }
  0xa3   : > { %p5153_p11 = pnand %p5151_p4, %p5582_p2  ;;  %p5159_p6 = scmp.lt.s32.totalorder %s5157_s14, %s5150_s12 }
  0xa5   : > { %p5154_p1 = pneg %p5153_p11  ;;  %p5160_p9 = por %p5159_p6, %p5158_p7 }
  0xa7   : > { %p5161_p10 = pnand %p5160_p9, %p5154_p1 }
  0xa9   : > { %5164 = shalt.err (!%p5161_p10)
}
  0xaa   : > { %p6407_p13 = scmp.ne.s32.totalorder %s6399_s24, 0  ;;  %s6408_s22 = smov 64  }
  0xab   : > { %s5165_s17 = scalar_lea.hbm %s6340_s2, 32 }
  0xac   : > { %4814 = dma.hbm_to_vmem [thread:$0]  (!%p6407_p13), %s5659_s16, 256, %s5662_s0, %s5576_s8, %s6408_s22, %s6408_s22, %s6375_s23  }
  0xad   : > { %p5166_p6 = scmp.ne.s32.totalorder %s6340_s2, %s5165_s17  ;;  %p5172_p5 = scmp.lt.u32.totalorder %s5165_s17, %s6340_s2 }
  0xaf   : > { %p5168_p12 = pnand %p5166_p6, %p6402_p8 }
  0xb1   : > { %p5169_p0 = pneg %p5168_p12 }
  0xb3   : > { %p5174_p3 = pnand %p5172_p5, %p5169_p0 }
  0xb5   : > { %5177 = shalt.err (!%p5174_p3)
}
  0xb6   : > { %s5178_s1 = scalar_lea.vmem %s427_s26, 32  ;;  %p5186_p7 = scmp.lt.s32.totalorder %s427_s26, %s427_s26 }
  0xb7   : > { %p5179_p4 = scmp.ne.s32.totalorder %s427_s26, %s5178_s1  ;;  %p5187_p9 = scmp.lt.s32.totalorder %s5178_s1, %s5178_s1 }
  0xb9   : > { %p5181_p11 = pnand %p5179_p4, %p6402_p8  ;;  %p5188_p10 = por %p5187_p9, %p5186_p7 }
  0xbb   : > { %p5182_p1 = pneg %p5181_p11 }
  0xbd   : > { %p5189_p13 = pnand %p5188_p10, %p5182_p1 }
  0xbf   : > { %5192 = shalt.err (!%p5189_p13)
}
  0xc0   : > { %p6409_p6 = scmp.ne.s32.totalorder %s6390_s21, 0  ;;  %s5371_s13 = smov [#allocation11]  }
  0xc1   : > { %s449_s15 = sshll.u32 %s5371_s13, 4  ;;  %s5372_s17 = smov [#allocation12]   ;;  %s450_s15 = int_to_ptr.vmem [resolvable:$true] %s449_s15 }
  0xc2   : > { %4798 = dma.hbm_to_vmem [thread:$0]  (!%p6409_p6), %s6340_s2, 32, %s427_s26, [#allocation7]  }
  0xc3   : > { %s462_s12 = sshll.u32 %s5372_s17, 4  ;;  %s5193_s14 = scalar_lea.hbm %s6342_s4, 256  ;;  %s463_s12 = int_to_ptr.vmem [resolvable:$true] %s462_s12 }
  0xc4   : > { %p5194_p13 = scmp.ne.s32.totalorder %s6342_s4, %s5193_s14  ;;  %p5200_p5 = scmp.lt.u32.totalorder %s5193_s14, %s6342_s4 }
  0xc6   : > { %p5196_p12 = pnand %p5194_p13, %p6402_p8 }
  0xc8   : > { %p5197_p0 = pneg %p5196_p12 }
  0xca   : > { %p5202_p3 = pnand %p5200_p5, %p5197_p0 }
  0xcc   : > { %5205 = shalt.err (!%p5202_p3)
}
  0xcd   : > { %s5206_s26 = scalar_lea.vmem %s450_s15, 256  ;;  %p5214_p7 = scmp.lt.s32.totalorder %s450_s15, %s450_s15 }
  0xce   : > { %p5207_p4 = scmp.ne.s32.totalorder %s450_s15, %s5206_s26  ;;  %p5215_p9 = scmp.lt.s32.totalorder %s5206_s26, %s5206_s26 }
  0xd0   : > { %p5209_p11 = pnand %p5207_p4, %p6402_p8  ;;  %p5216_p10 = por %p5215_p9, %p5214_p7 }
  0xd2   : > { %p5210_p1 = pneg %p5209_p11 }
  0xd4   : > { %p5217_p2 = pnand %p5216_p10, %p5210_p1 }
  0xd6   : > { %5220 = shalt.err (!%p5217_p2)
}
  0xd7   : > { %4804 = dma.hbm_to_vmem [thread:$0]  (!%p6409_p6), %s6342_s4, 256, %s450_s15, [#allocation10], %s6406_s6, %s6406_s6, %s6405_s9  }
  0xd8   : > { %s5221_s17 = scalar_lea.hbm %s6343_s5, 32 }
  0xd9   : > { %p5222_p13 = scmp.ne.s32.totalorder %s6343_s5, %s5221_s17  ;;  %p5228_p0 = scmp.lt.u32.totalorder %s5221_s17, %s6343_s5 }
  0xdb   : > { %p5224_p2 = pnand %p5222_p13, %p6402_p8 }
  0xdd   : > { %p5225_p12 = pneg %p5224_p2 }
  0xdf   : > { %p5230_p5 = pnand %p5228_p0, %p5225_p12 }
  0xe1   : > { %5233 = shalt.err (!%p5230_p5)
}
  0xe2   : > { %s5234_s16 = scalar_lea.vmem %s463_s12, 32  ;;  %p5242_p1 = scmp.lt.s32.totalorder %s463_s12, %s463_s12 }
  0xe3   : > { %p5235_p3 = scmp.ne.s32.totalorder %s463_s12, %s5234_s16  ;;  %p5243_p7 = scmp.lt.s32.totalorder %s5234_s16, %s5234_s16 }
  0xe5   : > { %p5237_p4 = pnand %p5235_p3, %p6402_p8  ;;  %p5244_p9 = por %p5243_p7, %p5242_p1 }
  0xe7   : > { %p5238_p11 = pneg %p5237_p4 }
  0xe9   : > { %p5245_p10 = pnand %p5244_p9, %p5238_p11 }
  0xeb   : > { %5248 = shalt.err (!%p5245_p10)
}
  0xec   : > { %s5373_s9 = smov 16   ;;  %s5374_s6 = smov 1  }
  0xed   : > { %4807 = dma.hbm_to_vmem [thread:$0]  (!%p6409_p6), %s6343_s5, 32, %s463_s12, [#allocation13], %s5373_s9, %s5373_s9, %s5374_s6  }
  0xee   : > { %s5753_s23 = scalar_lea.hbm %s6349_s11, %s5561_s18  ;;  %s546_s0 = scalar_lea.vmem [#allocation16], %s5558_s7 }
  0xef   : > { %s553_s13 = sshll.u32 %s546_s0, 4  ;;  %s5249_s17 = scalar_lea.hbm %s5753_s23, 256  ;;  %s5756_s13 = int_to_ptr.vmem [resolvable:$true] %s553_s13 }
  0xf0   : > { %p5250_p8 = scmp.ne.s32.totalorder %s5753_s23, %s5249_s17  ;;  %p6410_p13 = scmp.ne.s32.totalorder %s6400_s25, 0 }
  0xf1   : > { %s5254_s29 = scalar_lea.hbm %s6349_s11, 512  ;;  %p5255_p6 = scmp.lt.u32.totalorder %s5753_s23, %s6349_s11 }
  0xf2   : > { %p5252_p2 = pnand %p5250_p8, %p6410_p13  ;;  %p5256_p0 = scmp.lt.u32.totalorder %s5254_s29, %s5249_s17 }
  0xf3   : > { %p5258_p3 = scmp.lt.u32.totalorder %s5249_s17, %s5753_s23 }
  0xf4   : > { %p5253_p12 = pneg %p5252_p2  ;;  %p5257_p5 = por %p5256_p0, %p5255_p6 }
  0xf6   : > { %p5259_p4 = por %p5258_p3, %p5257_p5 }
  0xf8   : > { %p5260_p11 = pnand %p5259_p4, %p5253_p12 }
  0xfa   : > { %5263 = shalt.err (!%p5260_p11)
}
  0xfb   : > { %s5264_s7 = scalar_lea.vmem %s5756_s13, 256  ;;  %s5375_s14 = smov [#allocation16]  }
  0xfc   : > { %p5265_p1 = scmp.ne.s32.totalorder %s5756_s13, %s5264_s7  ;;  %s5269_s1 = sshll.u32 %s5375_s14, 4  ;;  %s5270_s1 = int_to_ptr.vmem [resolvable:$false] %s5269_s1 }
  0xfd   : > { %s5271_s16 = scalar_lea.vmem %s5270_s1, 512  ;;  %p5272_p10 = scmp.lt.s32.totalorder %s5756_s13, %s5270_s1 }
  0xfe   : > { %p5267_p7 = pnand %p5265_p1, %p6410_p13  ;;  %p5273_p8 = scmp.lt.s32.totalorder %s5271_s16, %s5264_s7 }
 0x100   : > { %p5268_p9 = pneg %p5267_p7  ;;  %p5274_p2 = por %p5273_p8, %p5272_p10 }
 0x102   : > { %p5275_p6 = pnand %p5274_p2, %p5268_p9 }
 0x104   : > { %5278 = shalt.err (!%p5275_p6)
}
 0x105   : > { %p6411_p12 = scmp.ne.s32.totalorder %s6399_s24, 0  ;;  %s6412_s9 = smov 4  }
 0x106   : > { %p6413_p13 = scmp.ne.s32.totalorder %s6389_s20, 0 }
 0x107   : > { %4817 = dma.hbm_to_vmem [thread:$0]  (!%p6411_p12), %s5753_s23, 256, %s5756_s13, %s5576_s8, %s6408_s22, %s6408_s22, %s6412_s9  }
 0x108   : > { %580 = sbr.rel (%p6413_p13) target bundleno = 7959 (0x1f17), region = 76  ;;  %p6414_p0 = scmp.eq.s32.totalorder (!%p6413_p13), %s5490_s19, 0 }
 0x10f   : > { %5322 = dma.done.wait (%p6414_p0), [#allocation4], 256   ;;  %p6415_p5 = pmov %p6414_p0 }
 0x110   : > { %p6416_p3 = pmov %p6414_p0 }
 0x111   : > { %5324 = vsyncadd (%p6415_p5), [#allocation4], 4294967040 }
 0x112   : > { %5326 = dma.done.wait (%p6416_p3), [#allocation7], 160   ;;  %p6417_p4 = pmov %p6414_p0 }
 0x113   : > { %p6418_p11 = pmov %p6414_p0 }
 0x114   : > { %5328 = vsyncadd (%p6417_p4), [#allocation7], 4294967136 }
 0x115   : > { %5330 = dma.done.wait (%p6418_p11), [#allocation10], 512   ;;  %p6419_p1 = pmov %p6414_p0 }
 0x116   : > { %p6420_p7 = pmov %p6414_p0 }
 0x117   : > { %5332 = vsyncadd (%p6419_p1), [#allocation10], 4294966784 }
 0x118   : > { %5334 = dma.done.wait (%p6420_p7), [#allocation13], 32   ;;  %p6421_p9 = pmov %p6414_p0 }
 0x119   : > { %s6422_s20 = sld [smem:[#allocation27_spill]]  ;;  %s606_s24 = sand.u32 1, %s5490_s19  }
 0x11a   : > { %5336 = vsyncadd (%p6421_p9), [#allocation13], 4294967264  ;;  %s608_s8 = sand.u32 1, %s5351_s30   ;;  %s607_s22 = scalar_lea.sflag [#allocation4], %s606_s24 }
 0x11b   : > { %s5803_s25 = sshll.u32 %s608_s8, 4 }
 0x11c   : > { %s610_s6 = scalar_lea.vmem [#allocation14], %s5803_s25 }
 0x11f   : > { %p6423_p10 = scmp.ne.s32.totalorder %s6422_s20, 0 }
 0x121   : > { %5338 = dma.done.wait (%p6423_p10), %s607_s22, 768  }
 0x122   : > { %5340 = vsyncadd (%p6423_p10), %s607_s22, 4294966528  ;;  %p702_p8 = scmp.lt.s32.totalorder %s5490_s19, 1  ;;  %s6424_s0 = sld [smem:[#allocation31_spill]] }
 0x123   : > { %s6425_s12 = sld [smem:[#allocation32_spill]]  ;;  %s6426_s7 = sld [smem:[#allocation33_spill]] }
 0x124   : > { %s703_s15 = scalar_select %p702_p8, %s5490_s19, 1 }
 0x125   : > { %s6427_s9 = sld [smem:[#allocation35_spill]]  ;;  %s6428_s28 = sld [smem:[#allocation36_spill]] }
 0x126   : > { %s4444_s26 = sshll.u32 %s703_s15, 4  ;;  %s4447_s3 = sshll.u32 %s703_s15, 5 }
 0x127   : > { %s4361_s24 = sshll.u32 %s703_s15, 3  ;;  %s628_s17 = scalar_lea.vmem [#allocation16], %s5803_s25 }
 0x128   : > { %s5815_s13 = scalar_lea.vmem %s6424_s0, %s4444_s26  ;;  %s619_s0 = scalar_lea.vmem [#allocation15], %s5803_s25 }
 0x129   : > { %s5820_s29 = scalar_lea.vmem %s6425_s12, %s4444_s26  ;;  %s5825_s14 = scalar_lea.vmem %s6426_s7, %s4444_s26 }
 0x12a   : > { %p6429_p2 = scmp.ne.s32.totalorder %s5490_s19, 0 }
 0x12b   : > { %s5830_s20 = scalar_lea.vmem %s6427_s9, %s4447_s3  ;;  %s5835_s23 = scalar_lea.vmem %s6428_s28, %s4361_s24  ;;  %v732_v0 = vld [vmem:[#allocation3] sm:$0xff] (!%p6429_p2)  ;;  %v734_v1 = vld [vmem:[#allocation6] sm:$0xff] (!%p6429_p2)  ;;  %vm737_vm0 = vcmask (!%p6429_p2), 261120   ;;  %v733_v2 = vld [vmem:[#allocation3 + $0x8] sm:$0xff] (!%p6429_p2)  ;;  %v765_v19 = vlaneseq (!%p6429_p2) }
 0x12c   : > { %730 = sbr.rel (%p6429_p2) target bundleno = 620 (0x26c), region = 116  ;;  %v735_v3 = vadd.f32 (!%p6429_p2), %v734_v1, %v732_v0  ;;  %v736_v4 = vadd.f32 (!%p6429_p2), %v734_v1, %v733_v2  ;;  %v731_v26 = vld [vmem:[#allocation8] sm:$0x3] (!%p6429_p2) }
 0x12d   : > { %v766_v23 = vshrl.u32 (!%p6429_p2), %v765_v19, 7 }
 0x12e   : > { %v738_v5 = vsel (!%p6429_p2), %vm737_vm0, %v735_v3, 0.0  ;;  %v741_v6 = vsel (!%p6429_p2), %vm737_vm0, %v736_v4, 0.0 }
 0x12f   : > { %739 = vadd.xlane.f32.xlu0 (!%p6429_p2), %v738_v5  ;;  %v767_v25 = vsub.s32 (!%p6429_p2), 0, %v766_v23  ;;  %v773_v27 = vsub.s32 (!%p6429_p2), 1, %v766_v23 }
 0x131   : > { %v768_v28 = vrot.slane (!%p6429_p2), %v731_v26, %v767_v25  ;;  %v774_v31 = vrot.slane (!%p6429_p2), %v731_v26, %v773_v27 }
 0x133   : > { %742 = vadd.xlane.f32.xlu0 %v741_v6 }
 0x1bc   : > { %v740_v7 = vpop.xlane.xlu0 %739 }
 0x1bd   : > { %v745_v8 = vmul.f32 0.03125, %v740_v7 }
 0x1bf   : > { %v747_v9 = vsub.f32 %v735_v3, %v745_v8 }
 0x1c0   : > { %v743_v10 = vpop.xlane.xlu0 %742 }
 0x1c1   : > { %v746_v11 = vmul.f32 0.03125, %v743_v10  ;;  %v749_v12 = vmul.f32 %v747_v9, %v747_v9 }
 0x1c3   : > { %v748_v13 = vsub.f32 %v736_v4, %v746_v11  ;;  %v751_v14 = vsel %vm737_vm0, %v749_v12, 0.0 }
 0x1c4   : > { %752 = vadd.xlane.f32.xlu1 %v751_v14 }
 0x1c5   : > { %v750_v15 = vmul.f32 %v748_v13, %v748_v13 }
 0x1c7   : > { %v754_v16 = vsel %vm737_vm0, %v750_v15, 0.0 }
 0x1c8   : > { %755 = vadd.xlane.f32.xlu1 %v754_v16 }
 0x251   : > { %v753_v17 = vpop.xlane.xlu1 %752 }
 0x252   : > { %v757_v18 = vmul.f32 0.03125, %v753_v17 }
 0x254   : > { %v759_v20 = vadd.f32 1e-06, %v757_v18 }
 0x255   : > { %v756_v21 = vpop.xlane.xlu1 %755 }
 0x256   : > { %4895 = vrsqrt.f32 %v759_v20  ;;  %v758_v22 = vmul.f32 0.03125, %v756_v21 }
 0x258   : > { %v760_v24 = vadd.f32 1e-06, %v758_v22 }
 0x25a   : > { %4897 = vrsqrt.f32 %v760_v24 }
 0x260   : > { %v4896_v29 = vpop.eup %4895 }
 0x261   : > { %v763_v30 = vmul.f32 %v4896_v29, %v747_v9 }
 0x263   : > { %v769_v32 = vmul.f32 %v768_v28, %v763_v30 }
 0x264   : > { %v4898_v33 = vpop.eup %4897 }
 0x265   : > { %v775_v34 = vadd.f32 %v774_v31, %v769_v32  ;;  %v764_v35 = vmul.f32 %v4898_v33, %v748_v13 }
 0x267   : > { %777 = vst.msk [vmem:[#allocation2] sm:$0xff] %vm737_vm0, %v775_v34  ;;  %v770_v36 = vmul.f32 %v768_v28, %v764_v35 }
 0x269   : > { %v776_v37 = vadd.f32 %v774_v31, %v770_v36 }
 0x26b   : > { %778 = vst.msk [vmem:[#allocation2 + $0x8] sm:$0xff] %vm737_vm0, %v776_v37 }
 0x26c PF: > { %v4929_v38 = vld [vmem:[%s5815_s13] sm:$0xff]   ;;  %v5376_v39 = vmov 0.0   ;;  %v4930_v40 = vld [vmem:[%s5815_s13 + $0x8] sm:$0xff]   ;;  %vm5377_vm1 = vmmov 0   ;;  %vm809_vm2 = vcmask 261120   ;;  %s5378_s15 = smov 120  }
 0x26d   : > { %4535 = vmatprep.subr.bf16.mxu0 %v5376_v39  ;;  %4548 = vmatprep.subr.mxu1 %v5376_v39  ;;  %vm857_vm3 = vcmask 64512   ;;  %v5886_v51 = vld [vmem:[#allocation11] sm:$0xff]  ;;  %v5889_v56 = vld [vmem:[#allocation11 + $0x8] sm:$0xff]  ;;  %s5379_s26 = smov 112   ;;  %s5380_s3 = smov 96   ;;  %vm2215_vm4 = vcmask 130048  }
 0x26e   : > { %4536 = vmatpush3.bf16.msra.mxu0 %v4929_v38  ;;  %4539 = vmatprep.mubr.msk.bf16.mxu0 %vm5377_vm1, %v5376_v39  ;;  %v5853_v41 = vld [vmem:[#allocation2] sm:$0xff]  ;;  %s5381_s13 = smov 104   ;;  %s5382_s21 = smov 88   ;;  %vm2218_vm5 = vcmask 195584   ;;  %vm4016_vm6 = vcmask 523264  }
 0x26f   : > { %4537 = vmatprep.subr.bf16.mxu0 %v5376_v39  ;;  %4550 = vmatprep.mubr.msk.f32.mxu1 %vm5377_vm1, %v5376_v39  ;;  %s5383_s12 = smov 72   ;;  %s5384_s27 = smov 80  }
 0x270   : > { %s5385_s18 = smov 64   ;;  %s5386_s7 = smov 48  }
 0x271   : > { %s5387_s1 = smov 56   ;;  %s5388_s16 = smov 40  }
 0x272   : > { %v5855_v42 = vld [vmem:[#allocation2 + $0x8] sm:$0xff]  ;;  %4538 = vmatpush3.bf16.msra.mxu0 %v4930_v40  ;;  %s5389_s9 = smov 8   ;;  %s5390_s24 = smov 16  }
 0x273   : > { %v796_v43 = vpack.c.bf16 %v5855_v42, %v5853_v41  ;;  %4543 = vmatprep.subr.mxu0 %v5376_v39  ;;  %s5391_s8 = smov 24   ;;  %p4436_p6 = scmp.ne.s32.totalorder %s5490_s19, 1 }
 0x275   : > { %4540 = vmatmul.mubr.msk.bf16.vlgmr.msra.gmra.mrb[0].mxu0 %vm809_vm2, %v796_v43 }
 0x276   : > { %4545 = vmatprep.mubr.msk.f32.mxu0 %vm5377_vm1, %v5376_v39 }
 0x348   : > { %v5866_v44 = vpop.f32.mrb[0].mxu0 }
 0x349   : > { %855 = vrot.lane.b32.xlu0 %v5866_v44, %s5378_s15  ;;  %v4541_v45 = vpop.f32.mrb[1].mxu0 }
 0x34a   : > { %v5870_v46 = vpop.f32.mrb[2].mxu0 }
 0x34b   : > { %v4542_v47 = vpop.f32.mrb[3].mxu0 }
 0x34d   : > { %933 = vrot.lane.b32.xlu0 %v5870_v46, %s5378_s15 }
 0x3bb   : > { %v856_v48 = vpop.permute.xlu0 %855 }
 0x3bc   : > { %4544 = vmatpush3.xpose.msk.msra.mxu0 %vm857_vm3, %v856_v48 }
 0x3bd   : > { %4558 = vmatprep.subr.mxu0 %v5376_v39 }
 0x3bf   : > { %4546 = vmatmul.mubr.msk.f32.vlgmr.msra.gmra.mrb[4].mxu0 %vm857_vm3, %v5866_v44  ;;  %v934_v49 = vpop.permute.xlu0 %933 }
 0x3c0   : > { %4549 = vmatpush3.xpose.msk.msra.mxu1 %vm857_vm3, %v934_v49  ;;  %4560 = vmatprep.mubr.msk.f32.mxu0 %vm5377_vm1, %v5376_v39 }
 0x3c1   : > { %4553 = vmatprep.subr.mxu1 %v5376_v39 }
 0x3c3   : > { %4551 = vmatmul.mubr.msk.f32.vlgmr.msra.gmra.mrb[0].mxu1 %vm857_vm3, %v5870_v46 }
 0x3c4   : > { %4555 = vmatprep.mubr.msk.f32.mxu1 %vm5377_vm1, %v5376_v39 }
 0x492   : > { %v928_v50 = vpop.f32.mrb[4].mxu0 }
 0x493   : > { %v1009_v52 = vmul.f32 0.35355338, %v928_v50  ;;  %v4547_v53 = vpop.f32.mrb[5].mxu0 }
 0x495   : > { %v1011_v54 = vadd.f32 %v1009_v52, %v5886_v51 }
 0x496   : > { %v1005_v55 = vpop.f32.mrb[0].mxu1 }
 0x497   : > { %v1010_v57 = vmul.f32 0.35355338, %v1005_v55  ;;  %v4552_v58 = vpop.f32.mrb[1].mxu1  ;;  %v1013_v59 = vsel %vm857_vm3, %v1011_v54, -inf }
 0x498   : > { %1014 = vmax.xlane.f32.xlu1 %v1013_v59 }
 0x499   : > { %v1012_v60 = vadd.f32 %v1010_v57, %v5889_v56 }
 0x49b   : > { %v1016_v61 = vsel %vm857_vm3, %v1012_v60, -inf }
 0x49c   : > { %1017 = vmax.xlane.f32.xlu1 %v1016_v61 }
 0x4ad   : > { %1035 = vrot.lane.b32.xlu1 %v5866_v44, %s5379_s26 }
 0x4b1   : > { %1111 = vrot.lane.b32.xlu1 %v5870_v46, %s5379_s26 }
 0x4b5   : > { %1189 = vrot.lane.b32.xlu1 %v5866_v44, %s5380_s3 }
 0x4b9   : > { %1267 = vrot.lane.b32.xlu1 %v5870_v46, %s5380_s3 }
 0x525   : > { %v1015_v62 = vpop.xlane.xlu1 %1014 }
 0x526   : > { %v1019_v63 = vsub.f32 %v1011_v54, %v1015_v62 }
 0x528   : > { %v1021_v0 = vmul.f32 1.442695, %v1019_v63 }
 0x529   : > { %v1018_v1 = vpop.xlane.xlu1 %1017 }
 0x52a   : > { %4945 = vpow2.f32 %v1021_v0  ;;  %v1020_v2 = vsub.f32 %v1012_v60, %v1018_v1 }
 0x52c   : > { %v1023_v3 = vmul.f32 1.442695, %v1020_v2 }
 0x52d   : > { %v1036_v4 = vpop.permute.xlu1 %1035 }
 0x52e   : > { %4947 = vpow2.f32 %v1023_v3  ;;  %4554 = vmatpush3.msra.mxu1 %v1036_v4 }
 0x52f   : > { %4563 = vmatprep.subr.mxu1 %v5376_v39 }
 0x531   : > { %v1112_v5 = vpop.permute.xlu1 %1111 }
 0x532   : > { %4559 = vmatpush3.msra.mxu0 %v1112_v5 }
 0x533   : > { %4568 = vmatprep.subr.mxu0 %v5376_v39 }
 0x534   : > { %v4946_v6 = vpop.eup %4945 }
 0x535   : > { %v1025_v7 = vsel %vm857_vm3, %v4946_v6, 0.0  ;;  %v1190_v10 = vpop.permute.xlu1 %1189 }
 0x536   : > { %1026 = vadd.xlane.f32.xlu0 %v1025_v7 }
 0x538   : > { %v4948_v8 = vpop.eup %4947 }
 0x539   : > { %v1028_v9 = vsel %vm857_vm3, %v4948_v8, 0.0  ;;  %v1268_v11 = vpop.permute.xlu1 %1267 }
 0x53a   : > { %1029 = vadd.xlane.f32.xlu1 %v1028_v9 }
 0x54b   : > { %1265 = vrot.lane.b32.xlu1 %v5870_v46, %s5381_s13 }
 0x54c   : > { %1187 = vrot.lane.b32.xlu0 %v5866_v44, %s5381_s13 }
 0x5c3   : > { %v1027_v12 = vpop.xlane.xlu0 %1026 }
 0x5c4   : > { %4949 = vrcp.f32 %v1027_v12 }
 0x5c7   : > { %v1030_v13 = vpop.xlane.xlu1 %1029  ;;  %v1188_v18 = vpop.permute.xlu0 %1187 }
 0x5c8   : > { %4951 = vrcp.f32 %v1030_v13 }
 0x5cb   : > { %v1266_v19 = vpop.permute.xlu1 %1265 }
 0x5ce   : > { %v4950_v14 = vpop.eup %4949 }
 0x5cf   : > { %v1033_v15 = vmul.f32 %v4950_v14, %v4946_v6 }
 0x5d1   : > { %4556 = vmatmul.mubr.msk.f32.vlgmr.msra.gmra.mrb[2].mxu1 %vm857_vm3, %v1033_v15 }
 0x5d2   : > { %v4952_v16 = vpop.eup %4951  ;;  %4564 = vmatpush3.xpose.msk.msra.mxu1 %vm857_vm3, %v1190_v10  ;;  %4565 = vmatprep.mubr.msk.f32.mxu1 %vm5377_vm1, %v5376_v39 }
 0x5d3   : > { %v1034_v17 = vmul.f32 %v4952_v16, %v4948_v8  ;;  %4573 = vmatprep.subr.mxu1 %v5376_v39 }
 0x5d5   : > { %4561 = vmatmul.mubr.msk.f32.vlgmr.msra.gmra.mrb[6].mxu0 %vm857_vm3, %v1034_v17  ;;  %4566 = vmatmul.mubr.msk.f32.vlgmr.msra.gmra.mrb[4].mxu1 %vm857_vm3, %v1188_v18 }
 0x5d6   : > { %4569 = vmatpush3.xpose.msk.msra.mxu0 %vm857_vm3, %v1268_v11  ;;  %4570 = vmatprep.mubr.msk.f32.mxu0 %vm5377_vm1, %v5376_v39 }
 0x5d7   : > { %4578 = vmatprep.subr.mxu0 %v5376_v39  ;;  %4575 = vmatprep.mubr.msk.f32.mxu1 %vm5377_vm1, %v5376_v39 }
 0x5d9   : > { %4571 = vmatmul.mubr.msk.f32.vlgmr.msra.gmra.mrb[8].mxu0 %vm857_vm3, %v1266_v19 }
 0x5da   : > { %4580 = vmatprep.mubr.msk.f32.mxu0 %vm5377_vm1, %v5376_v39 }
 0x6a4   : > { %v5926_v20 = vpop.f32.mrb[2].mxu1 }
 0x6a5   : > { %v4557_v21 = vpop.f32.mrb[3].mxu1 }
 0x6a8   : > { %v5928_v22 = vpop.f32.mrb[6].mxu0  ;;  %v1261_v23 = vpop.f32.mrb[4].mxu1 }
 0x6a9   : > { %v1343_v24 = vmul.f32 0.35355338, %v1261_v23  ;;  %v4562_v25 = vpop.f32.mrb[7].mxu0  ;;  %v4567_v26 = vpop.f32.mrb[5].mxu1 }
 0x6ab   : > { %v1345_v27 = vadd.f32 %v1343_v24, %v5886_v51 }
 0x6ac   : > { %v1339_v28 = vpop.f32.mrb[8].mxu0 }
 0x6ad   : > { %v1344_v29 = vmul.f32 0.35355338, %v1339_v28  ;;  %v4572_v30 = vpop.f32.mrb[9].mxu0  ;;  %v1347_v31 = vsel %vm857_vm3, %v1345_v27, -inf }
 0x6ae   : > { %1348 = vmax.xlane.f32.xlu1 %v1347_v31 }
 0x6af   : > { %v1346_v32 = vadd.f32 %v1344_v29, %v5889_v56 }
 0x6b1   : > { %v1350_v33 = vsel %vm857_vm3, %v1346_v32, -inf }
 0x6b2   : > { %1351 = vmax.xlane.f32.xlu0 %v1350_v33 }
 0x6bf   : > { %1369 = vrot.lane.b32.xlu1 %v5866_v44, %s5382_s21 }
 0x6c3   : > { %1523 = vrot.lane.b32.xlu1 %v5866_v44, %s5383_s12 }
 0x6c7   : > { %1601 = vrot.lane.b32.xlu1 %v5870_v46, %s5383_s12 }
 0x6c8   : > { %1445 = vrot.lane.b32.xlu0 %v5870_v46, %s5382_s21 }
 0x6cc   : > { %1521 = vrot.lane.b32.xlu0 %v5866_v44, %s5384_s27 }
 0x73b   : > { %v1349_v34 = vpop.xlane.xlu1 %1348 }
 0x73c   : > { %v1353_v35 = vsub.f32 %v1345_v27, %v1349_v34 }
 0x73e   : > { %v1355_v36 = vmul.f32 1.442695, %v1353_v35 }
 0x73f   : > { %v1370_v37 = vpop.permute.xlu1 %1369  ;;  %v1352_v38 = vpop.xlane.xlu0 %1351 }
 0x740   : > { %4953 = vpow2.f32 %v1355_v36  ;;  %v1354_v40 = vsub.f32 %v1346_v32, %v1352_v38  ;;  %4574 = vmatpush3.msra.mxu1 %v1370_v37 }
 0x741   : > { %4583 = vmatprep.subr.mxu1 %v5376_v39 }
 0x742   : > { %v1357_v43 = vmul.f32 1.442695, %v1354_v40 }
 0x743   : > { %v1446_v45 = vpop.permute.xlu0 %1445  ;;  %v1524_v52 = vpop.permute.xlu1 %1523 }
 0x744   : > { %4955 = vpow2.f32 %v1357_v43  ;;  %4579 = vmatpush3.msra.mxu0 %v1446_v45 }
 0x745   : > { %4588 = vmatprep.subr.mxu0 %v5376_v39 }
 0x747   : > { %v1602_v53 = vpop.permute.xlu1 %1601  ;;  %v1522_v61 = vpop.permute.xlu0 %1521 }
 0x74a   : > { %v4954_v47 = vpop.eup %4953 }
 0x74b   : > { %v1359_v48 = vsel %vm857_vm3, %v4954_v47, 0.0 }
 0x74c   : > { %1360 = vadd.xlane.f32.xlu1 %v1359_v48 }
 0x74e   : > { %v4956_v49 = vpop.eup %4955 }
 0x74f   : > { %v1362_v50 = vsel %vm857_vm3, %v4956_v49, 0.0 }
 0x750   : > { %1363 = vadd.xlane.f32.xlu1 %v1362_v50 }
 0x761   : > { %1599 = vrot.lane.b32.xlu1 %v5870_v46, %s5384_s27 }
 0x7d9   : > { %v1361_v54 = vpop.xlane.xlu1 %1360 }
 0x7da   : > { %4957 = vrcp.f32 %v1361_v54 }
 0x7dd   : > { %v1364_v55 = vpop.xlane.xlu1 %1363 }
 0x7de   : > { %4959 = vrcp.f32 %v1364_v55 }
 0x7e1   : > { %v1600_v62 = vpop.permute.xlu1 %1599 }
 0x7e4   : > { %v4958_v57 = vpop.eup %4957 }
 0x7e5   : > { %v1367_v58 = vmul.f32 %v4958_v57, %v4954_v47 }
 0x7e7   : > { %4576 = vmatmul.mubr.msk.f32.vlgmr.msra.gmra.mrb[6].mxu1 %vm857_vm3, %v1367_v58 }
 0x7e8   : > { %v4960_v59 = vpop.eup %4959  ;;  %4584 = vmatpush3.xpose.msk.msra.mxu1 %vm857_vm3, %v1524_v52  ;;  %4585 = vmatprep.mubr.msk.f32.mxu1 %vm5377_vm1, %v5376_v39 }
 0x7e9   : > { %v1368_v60 = vmul.f32 %v4960_v59, %v4956_v49  ;;  %4593 = vmatprep.subr.mxu1 %v5376_v39 }
 0x7eb   : > { %4581 = vmatmul.mubr.msk.f32.vlgmr.msra.gmra.mrb[10].mxu0 %vm857_vm3, %v1368_v60  ;;  %4586 = vmatmul.mubr.msk.f32.vlgmr.msra.gmra.mrb[8].mxu1 %vm857_vm3, %v1522_v61 }
 0x7ec   : > { %4589 = vmatpush3.xpose.msk.msra.mxu0 %vm857_vm3, %v1602_v53  ;;  %4590 = vmatprep.mubr.msk.f32.mxu0 %vm5377_vm1, %v5376_v39 }
 0x7ed   : > { %4598 = vmatprep.subr.mxu0 %v5376_v39  ;;  %4595 = vmatprep.mubr.msk.f32.mxu1 %vm5377_vm1, %v5376_v39 }
 0x7ef   : > { %4591 = vmatmul.mubr.msk.f32.vlgmr.msra.gmra.mrb[12].mxu0 %vm857_vm3, %v1600_v62 }
 0x7f0   : > { %4600 = vmatprep.mubr.msk.f32.mxu0 %vm5377_vm1, %v5376_v39 }
 0x8ba   : > { %v5966_v63 = vpop.f32.mrb[6].mxu1 }
 0x8bb   : > { %v4577_v0 = vpop.f32.mrb[7].mxu1 }
 0x8be   : > { %v5968_v1 = vpop.f32.mrb[10].mxu0  ;;  %v1595_v2 = vpop.f32.mrb[8].mxu1 }
 0x8bf   : > { %v4899_v3 = vpack.i.bf16 %v5968_v1, %v5966_v63  ;;  %v1677_v4 = vmul.f32 0.35355338, %v1595_v2  ;;  %v4582_v5 = vpop.f32.mrb[11].mxu0  ;;  %v4587_v6 = vpop.f32.mrb[9].mxu1 }
 0x8c1   : > { %v1679_v7 = vadd.f32 %v1677_v4, %v5886_v51 }
 0x8c2   : > { %v1673_v8 = vpop.f32.mrb[12].mxu0 }
 0x8c3   : > { %v1678_v9 = vmul.f32 0.35355338, %v1673_v8  ;;  %v4592_v10 = vpop.f32.mrb[13].mxu0  ;;  %v1681_v11 = vsel %vm857_vm3, %v1679_v7, -inf }
 0x8c4   : > { %1682 = vmax.xlane.f32.xlu0 %v1681_v11  ;;  %v4932_v11 = vld [vmem:[%s5820_s29 + $0x8] sm:$0xff]  }
 0x8c5   : > { %v1680_v12 = vadd.f32 %v1678_v9, %v5889_v56 }
 0x8c7   : > { %v1684_v13 = vsel %vm857_vm3, %v1680_v12, -inf }
 0x8c8   : > { %1685 = vmax.xlane.f32.xlu1 %v1684_v13 }
 0x8d9   : > { %1703 = vrot.lane.b32.xlu1 %v5866_v44, %s5385_s18 }
 0x8da   : > { %1779 = vrot.lane.b32.xlu0 %v5870_v46, %s5385_s18 }
 0x8dd   : > { %1857 = vrot.lane.b32.xlu1 %v5866_v44, %s5386_s7 }
 0x8e1   : > { %1935 = vrot.lane.b32.xlu1 %v5870_v46, %s5386_s7 }
 0x8e5   : > { %1933 = vrot.lane.b32.xlu1 %v5870_v46, %s5387_s1 }
 0x951   : > { %v1683_v14 = vpop.xlane.xlu0 %1682 }
 0x952   : > { %v1687_v15 = vsub.f32 %v1679_v7, %v1683_v14 }
 0x954   : > { %v1689_v16 = vmul.f32 1.442695, %v1687_v15 }
 0x955   : > { %v1780_v17 = vpop.permute.xlu0 %1779  ;;  %v1686_v18 = vpop.xlane.xlu1 %1685 }
 0x956   : > { %4961 = vpow2.f32 %v1689_v16  ;;  %v1688_v19 = vsub.f32 %v1680_v12, %v1686_v18  ;;  %4599 = vmatpush3.msra.mxu0 %v1780_v17 }
 0x957   : > { %4608 = vmatprep.subr.mxu0 %v5376_v39 }
 0x958   : > { %v1691_v21 = vmul.f32 1.442695, %v1688_v19 }
 0x959   : > { %v1704_v23 = vpop.permute.xlu1 %1703 }
 0x95a   : > { %4963 = vpow2.f32 %v1691_v21  ;;  %4594 = vmatpush3.msra.mxu1 %v1704_v23 }
 0x95b   : > { %4603 = vmatprep.subr.mxu1 %v5376_v39 }
 0x95d   : > { %v1858_v30 = vpop.permute.xlu1 %1857 }
 0x960   : > { %v4962_v24 = vpop.eup %4961 }
 0x961   : > { %v1693_v25 = vsel %vm857_vm3, %v4962_v24, 0.0  ;;  %v1936_v34 = vpop.permute.xlu1 %1935 }
 0x962   : > { %1694 = vadd.xlane.f32.xlu0 %v1693_v25 }
 0x964   : > { %v4964_v26 = vpop.eup %4963 }
 0x965   : > { %v1696_v27 = vsel %vm857_vm3, %v4964_v26, 0.0  ;;  %v1934_v37 = vpop.permute.xlu1 %1933 }
 0x966   : > { %1697 = vadd.xlane.f32.xlu0 %v1696_v27 }
 0x97c   : > { %1855 = vrot.lane.b32.xlu0 %v5866_v44, %s5387_s1 }
 0x9ef   : > { %v1695_v28 = vpop.xlane.xlu0 %1694 }
 0x9f0   : > { %4965 = vrcp.f32 %v1695_v28 }
 0x9f3   : > { %v1698_v29 = vpop.xlane.xlu0 %1697 }
 0x9f4   : > { %4967 = vrcp.f32 %v1698_v29 }
 0x9f7   : > { %v1856_v36 = vpop.permute.xlu0 %1855 }
 0x9fa   : > { %v4966_v31 = vpop.eup %4965 }
 0x9fb   : > { %v1701_v32 = vmul.f32 %v4966_v31, %v4962_v24 }
 0x9fd   : > { %4596 = vmatmul.mubr.msk.f32.vlgmr.msra.gmra.mrb[10].mxu1 %vm857_vm3, %v1701_v32 }
 0x9fe   : > { %v4968_v33 = vpop.eup %4967  ;;  %4604 = vmatpush3.xpose.msk.msra.mxu1 %vm857_vm3, %v1858_v30  ;;  %4605 = vmatprep.mubr.msk.f32.mxu1 %vm5377_vm1, %v5376_v39 }
 0x9ff   : > { %v1702_v35 = vmul.f32 %v4968_v33, %v4964_v26  ;;  %4613 = vmatprep.subr.mxu1 %v5376_v39 }
 0xa01   : > { %4601 = vmatmul.mubr.msk.f32.vlgmr.msra.gmra.mrb[14].mxu0 %vm857_vm3, %v1702_v35  ;;  %4606 = vmatmul.mubr.msk.f32.vlgmr.msra.gmra.mrb[12].mxu1 %vm857_vm3, %v1856_v36 }
 0xa02   : > { %4609 = vmatpush3.xpose.msk.msra.mxu0 %vm857_vm3, %v1936_v34  ;;  %4610 = vmatprep.mubr.msk.f32.mxu0 %vm5377_vm1, %v5376_v39 }
 0xa03   : > { %4618 = vmatprep.subr.mxu0 %v5376_v39  ;;  %4615 = vmatprep.mubr.msk.f32.mxu1 %vm5377_vm1, %v5376_v39 }
 0xa05   : > { %4611 = vmatmul.mubr.msk.f32.vlgmr.msra.gmra.mrb[16].mxu0 %vm857_vm3, %v1934_v37 }
 0xa06   : > { %4620 = vmatprep.mubr.msk.f32.mxu0 %vm5377_vm1, %v5376_v39 }
 0xad0   : > { %v1775_v38 = vpop.f32.mrb[10].mxu1 }
 0xad1   : > { %v4597_v40 = vpop.f32.mrb[11].mxu1 }
 0xad4   : > { %v1851_v43 = vpop.f32.mrb[14].mxu0  ;;  %v1929_v45 = vpop.f32.mrb[12].mxu1 }
 0xad5   : > { %v4904_v47 = vpack.i.bf16 %v1851_v43, %v1775_v38  ;;  %v2011_v48 = vmul.f32 0.35355338, %v1929_v45  ;;  %v4602_v49 = vpop.f32.mrb[15].mxu0  ;;  %v4607_v50 = vpop.f32.mrb[13].mxu1 }
 0xad7   : > { %v2013_v52 = vadd.f32 %v2011_v48, %v5886_v51 }
 0xad8   : > { %v2007_v53 = vpop.f32.mrb[16].mxu0 }
 0xad9   : > { %v2012_v54 = vmul.f32 0.35355338, %v2007_v53  ;;  %v4612_v55 = vpop.f32.mrb[17].mxu0  ;;  %v2015_v57 = vsel %vm857_vm3, %v2013_v52, -inf }
 0xada   : > { %2016 = vmax.xlane.f32.xlu0 %v2015_v57  ;;  %v4933_v55 = vld [vmem:[%s610_s6] sm:$0xff]   ;;  %v4934_v57 = vld [vmem:[%s610_s6 + $0x8] sm:$0xff]  }
 0xadb   : > { %v2014_v58 = vadd.f32 %v2012_v54, %v5889_v56 }
 0xadd   : > { %v2018_v59 = vsel %vm857_vm3, %v2014_v58, -inf }
 0xade   : > { %2019 = vmax.xlane.f32.xlu1 %v2018_v59  ;;  %v781_v59 = vld [vmem:[#allocation9] sm:$0xff] }
 0xaef   : > { %2037 = vrot.lane.b32.xlu1 %v5866_v44, %s5388_s16 }
 0xaf3   : > { %4900 = vrot.lane.b32.xlu1 %v4899_v3, %s5389_s9 }
 0xaf7   : > { %4905 = vrot.lane.b32.xlu1 %v4904_v47, %s5390_s24 }
 0xb67   : > { %v2017_v51 = vpop.xlane.xlu0 %2016 }
 0xb68   : > { %v2021_v60 = vsub.f32 %v2013_v52, %v2017_v51  ;;  %v782_v51 = vld [vmem:[#allocation9 + $0x8] sm:$0xff] }
 0xb6a   : > { %v2023_v61 = vmul.f32 1.442695, %v2021_v60  ;;  %v2386_v60 = vpack.c.bf16 %v782_v51, %v781_v59 }
 0xb6b   : > { %v2020_v62 = vpop.xlane.xlu1 %2019 }
 0xb6c   : > { %4969 = vpow2.f32 %v2023_v61  ;;  %v2022_v56 = vsub.f32 %v2014_v58, %v2020_v62  ;;  %v4935_v58 = vld [vmem:[%s5825_s14] sm:$0xff]   ;;  %v4936_v61 = vld [vmem:[%s5825_s14 + $0x8] sm:$0xff]  }
 0xb6e   : > { %v2025_v0 = vmul.f32 1.442695, %v2022_v56 }
 0xb6f   : > { %v2038_v2 = vpop.permute.xlu1 %2037 }
 0xb70   : > { %4971 = vpow2.f32 %v2025_v0  ;;  %4614 = vmatpush3.msra.mxu1 %v2038_v2  ;;  %v2305_v0 = vlaneseq }
 0xb71   : > { %4623 = vmatprep.subr.bf16.mxu1 %v5376_v39 }
 0xb73   : > { %v4901_v17 = vpop.permute.xlu1 %4900 }
 0xb74   : > { %v4903_v19 = vunpack.i.h.bf16 %v4901_v17  ;;  %v4902_v21 = vunpack.i.l.bf16 %v4901_v17 }
 0xb76   : > { %v4970_v44 = vpop.eup %4969  ;;  %v2214_v26 = vsel %vm857_vm3, %v5928_v22, %v4903_v19  ;;  %v2213_v27 = vsel %vm857_vm3, %v5926_v20, %v4902_v21 }
 0xb77   : > { %v2027_v4 = vsel %vm857_vm3, %v4970_v44, 0.0  ;;  %v4906_v18 = vpop.permute.xlu1 %4905 }
 0xb78   : > { %2028 = vadd.xlane.f32.xlu0 %v2027_v4  ;;  %v4908_v23 = vunpack.i.h.bf16 %v4906_v18  ;;  %v4907_v24 = vunpack.i.l.bf16 %v4906_v18 }
 0xb7a   : > { %v4972_v63 = vpop.eup %4971  ;;  %v2216_v30 = vsel %vm2215_vm4, %v2213_v27, %v4907_v24  ;;  %v2217_v31 = vsel %vm2215_vm4, %v2214_v26, %v4908_v23 }
 0xb7b   : > { %v2030_v1 = vsel %vm857_vm3, %v4972_v63, 0.0 }
 0xb7c   : > { %2031 = vadd.xlane.f32.xlu0 %v2030_v1  ;;  %v6058_v1 = vshrl.u32 %v2305_v0, 7 }
 0xb92   : > { %2113 = vrot.lane.b32.xlu0 %v5870_v46, %s5388_s16  ;;  %v4931_v46 = vld [vmem:[%s5820_s29] sm:$0xff]  }
 0xc05   : > { %v2029_v3 = vpop.xlane.xlu0 %2028 }
 0xc06   : > { %4973 = vrcp.f32 %v2029_v3  ;;  %v2307_v3 = vsub.s32 0, %v6058_v1 }
 0xc09   : > { %v2032_v5 = vpop.xlane.xlu0 %2031 }
 0xc0a   : > { %4975 = vrcp.f32 %v2032_v5  ;;  %v6062_v5 = vld [vmem:[%s5835_s23] sm:$0xff] }
 0xc0d   : > { %v2114_v6 = vpop.permute.xlu0 %2113 }
 0xc0e   : > { %4619 = vmatpush3.msra.mxu0 %v2114_v6  ;;  %v2308_v6 = vrot.slane %v6062_v5, %v2307_v3 }
 0xc0f   : > { %4631 = vmatprep.subr.bf16.mxu0 %v5376_v39 }
 0xc10   : > { %v4974_v7 = vpop.eup %4973 }
 0xc11   : > { %v2035_v8 = vmul.f32 %v4974_v7, %v4970_v44  ;;  %v2313_v7 = vsub.s32 1, %v6058_v1 }
 0xc13   : > { %4616 = vmatmul.mubr.msk.f32.vlgmr.msra.gmra.mrb[14].mxu1 %vm857_vm3, %v2035_v8 }
 0xc14   : > { %v4976_v9 = vpop.eup %4975  ;;  %4627 = vmatprep.mubr.msk.bf16.mxu1 %vm5377_vm1, %v5376_v39  ;;  %4624 = vmatpush3.bf16.msra.mxu1 %v4931_v46 }
 0xc15   : > { %v2036_v10 = vmul.f32 %v4976_v9, %v4972_v63  ;;  %4625 = vmatprep.subr.bf16.mxu1 %v5376_v39 }
 0xc17   : > { %4621 = vmatmul.mubr.msk.f32.vlgmr.msra.gmra.mrb[18].mxu0 %vm857_vm3, %v2036_v10 }
 0xc18   : > { %4635 = vmatprep.mubr.msk.bf16.mxu0 %vm5377_vm1, %v5376_v39  ;;  %4626 = vmatpush3.bf16.msra.mxu1 %v4932_v11 }
 0xc19   : > { %4639 = vmatprep.subr.bf16.mxu1 %v5376_v39  ;;  %4632 = vmatpush3.bf16.msra.mxu0 %v4935_v58 }
 0xc1a   : > { %4633 = vmatprep.subr.bf16.mxu0 %v5376_v39 }
 0xc1d   : > { %4634 = vmatpush3.bf16.msra.mxu0 %v4936_v61 }
 0xc1e   : > { %4647 = vmatprep.subr.mxu0 %v5376_v39 }
 0xce6   : > { %v2109_v12 = vpop.f32.mrb[14].mxu1 }
 0xce7   : > { %v4617_v13 = vpop.f32.mrb[15].mxu1 }
 0xcea   : > { %v2185_v14 = vpop.f32.mrb[18].mxu0 }
 0xceb   : > { %v4909_v15 = vpack.i.bf16 %v2185_v14, %v2109_v12  ;;  %v4622_v16 = vpop.f32.mrb[19].mxu0  ;;  %v2314_v12 = vrot.slane %v6062_v5, %v2313_v7 }
 0xced   : > { %4910 = vrot.lane.b32.xlu0 %v4909_v15, %s5391_s8 }
 0xd5f   : > { %v4911_v25 = vpop.permute.xlu0 %4910 }
 0xd60   : > { %v4913_v28 = vunpack.i.h.bf16 %v4911_v25  ;;  %v4912_v29 = vunpack.i.l.bf16 %v4911_v25 }
 0xd62   : > { %v2220_v32 = vsel %vm2218_vm5, %v2217_v31, %v4913_v28  ;;  %v2219_v33 = vsel %vm2218_vm5, %v2216_v30, %v4912_v29  ;;  %v6098_v28 = vld [vmem:[#allocation12] ss:$0 sm:$0xff] }
 0xd63   : > { %v2221_v34 = vpack.c.bf16 %v2220_v32, %v2219_v33  ;;  %v6101_v33 = vld [vmem:[#allocation12 + $0x1] ss:$0 sm:$0xff] }
 0xd65   : > { %4628 = vmatmul.mubr.msk.bf16.vlgmr.msra.gmra.mrb[16].mxu1 %vm809_vm2, %v2221_v34 }
 0xd66   : > { %4643 = vmatprep.mubr.msk.bf16.mxu1 %vm5377_vm1, %v5376_v39  ;;  %4640 = vmatpush3.bf16.msra.mxu1 %v4933_v55 }
 0xd67   : > { %4641 = vmatprep.subr.bf16.mxu1 %v5376_v39 }
 0xd6a   : > { %4642 = vmatpush3.bf16.msra.mxu1 %v4934_v57 }
 0xd6b   : > { %4657 = vmatprep.subr.mxu1 %v5376_v39 }
 0xd6d   : > { %4644 = vmatmul.mubr.msk.bf16.vlgmr.msra.gmra.mrb[20].mxu1 %vm809_vm2, %v2386_v60 }
 0xd6e   : > { %4659 = vmatprep.mubr.msk.f32.mxu1 %vm5377_vm1, %v5376_v39 }
 0xe38   : > { %v2271_v22 = vpop.f32.mrb[16].mxu1 }
 0xe39   : > { %v2272_v35 = vadd.f32 %v2271_v22, %v5853_v41  ;;  %v4629_v20 = vpop.f32.mrb[17].mxu1 }
 0xe3a   : > { %v2274_v36 = vpop.f32.mrb[18].mxu1 }
 0xe3b   : > { %v2275_v37 = vadd.f32 %v2274_v36, %v5855_v42  ;;  %v4630_v38 = vpop.f32.mrb[19].mxu1  ;;  %v2278_v40 = vsel %vm809_vm2, %v2272_v35, 0.0 }
 0xe3c   : > { %2279 = vadd.xlane.f32.xlu1 %v2278_v40 }
 0xe3d   : > { %v2281_v43 = vsel %vm809_vm2, %v2275_v37, 0.0 }
 0xe3e   : > { %2282 = vadd.xlane.f32.xlu0 %v2281_v43 }
 0xe40   : > { %v6076_v17 = vpop.f32.mrb[20].mxu1 }
 0xe41   : > { %v4645_v18 = vpop.f32.mrb[21].mxu1 }
 0xe42   : > { %v6080_v19 = vpop.f32.mrb[22].mxu1 }
 0xe43   : > { %v4646_v21 = vpop.f32.mrb[23].mxu1 }
 0xec9   : > { %v2280_v45 = vpop.xlane.xlu1 %2279 }
 0xeca   : > { %v2285_v47 = vmul.f32 0.03125, %v2280_v45 }
 0xecb   : > { %v2283_v48 = vpop.xlane.xlu0 %2282 }
 0xecc   : > { %v2287_v49 = vsub.f32 %v2272_v35, %v2285_v47  ;;  %v2286_v50 = vmul.f32 0.03125, %v2283_v48 }
 0xece   : > { %v2288_v41 = vsub.f32 %v2275_v37, %v2286_v50  ;;  %v2289_v52 = vmul.f32 %v2287_v49, %v2287_v49 }
 0xed0   : > { %v2291_v53 = vsel %vm809_vm2, %v2289_v52, 0.0  ;;  %v2290_v42 = vmul.f32 %v2288_v41, %v2288_v41 }
 0xed1   : > { %2292 = vadd.xlane.f32.xlu0 %v2291_v53 }
 0xed2   : > { %v2294_v54 = vsel %vm809_vm2, %v2290_v42, 0.0 }
 0xed3   : > { %2295 = vadd.xlane.f32.xlu1 %v2294_v54 }
 0xf5e   : > { %v2293_v62 = vpop.xlane.xlu0 %2292 }
 0xf5f   : > { %v2297_v56 = vmul.f32 0.03125, %v2293_v62 }
 0xf60   : > { %v2296_v2 = vpop.xlane.xlu1 %2295 }
 0xf61   : > { %v2299_v44 = vadd.f32 1e-06, %v2297_v56  ;;  %v2298_v4 = vmul.f32 0.03125, %v2296_v2 }
 0xf63   : > { %4977 = vrsqrt.f32 %v2299_v44  ;;  %v2300_v63 = vadd.f32 1e-06, %v2298_v4 }
 0xf65   : > { %4979 = vrsqrt.f32 %v2300_v63 }
 0xf6d   : > { %v4978_v8 = vpop.eup %4977 }
 0xf6e   : > { %v2303_v9 = vmul.f32 %v4978_v8, %v2287_v49 }
 0xf6f   : > { %v4980_v10 = vpop.eup %4979 }
 0xf70   : > { %v2309_v46 = vmul.f32 %v2308_v6, %v2303_v9  ;;  %v2304_v11 = vmul.f32 %v4980_v10, %v2288_v41 }
 0xf72   : > { %v2310_v13 = vmul.f32 %v2308_v6, %v2304_v11  ;;  %v6067_v14 = vadd.f32 %v2314_v12, %v2309_v46 }
 0xf74   : > { %v6069_v15 = vadd.f32 %v2314_v12, %v2310_v13 }
 0xf76   : > { %v2329_v16 = vpack.c.bf16 %v6069_v15, %v6067_v14 }
 0xf78   : > { %4636 = vmatmul.mubr.msk.bf16.vlgmr.msra.gmra.mrb[20].mxu0 %vm809_vm2, %v2329_v16 }
 0xf79   : > { %4649 = vmatprep.mubr.msk.f32.mxu0 %vm5377_vm1, %v5376_v39  ;;  %4648 = vmatpush3.xpose.msk.msra.mxu0 %vm857_vm3, %v6076_v17 }
 0xf7a   : > { %4652 = vmatprep.subr.mxu0 %v5376_v39 }
0x104b   : > { %v6083_v23 = vpop.f32.mrb[20].mxu0 }
0x104c   : > { %v4637_v24 = vpop.f32.mrb[21].mxu0  ;;  %4650 = vmatmul.mubr.msk.f32.vlgmr.msra.gmra.mrb[24].mxu0 %vm857_vm3, %v6083_v23 }
0x104d   : > { %4653 = vmatpush3.xpose.msk.msra.mxu0 %vm857_vm3, %v6080_v19  ;;  %v6089_v25 = vpop.f32.mrb[22].mxu0  ;;  %4654 = vmatprep.mubr.msk.f32.mxu0 %vm5377_vm1, %v5376_v39 }
0x104e   : > { %v4638_v26 = vpop.f32.mrb[23].mxu0  ;;  %4662 = vmatprep.subr.mxu0 %v5376_v39 }
0x1050   : > { %4655 = vmatmul.mubr.msk.f32.vlgmr.msra.gmra.mrb[26].mxu0 %vm857_vm3, %v6089_v25 }
0x1051   : > { %4664 = vmatprep.mubr.msk.f32.mxu0 %vm5377_vm1, %v5376_v39 }
0x111f   : > { %v2515_v27 = vpop.f32.mrb[24].mxu0 }
0x1120   : > { %v2595_v29 = vmul.f32 0.35355338, %v2515_v27  ;;  %v4651_v30 = vpop.f32.mrb[25].mxu0 }
0x1122   : > { %v2609_v31 = vadd.f32 %v6098_v28, %v2595_v29 }
0x1123   : > { %v2591_v32 = vpop.f32.mrb[26].mxu0 }
0x1124   : > { %v2596_v34 = vmul.f32 0.35355338, %v2591_v32  ;;  %v4656_v22 = vpop.f32.mrb[27].mxu0  ;;  %v2611_v35 = vsel %vm857_vm3, %v2609_v31, -inf }
0x1125   : > { %2612 = vmax.xlane.f32.xlu0 %v2611_v35 }
0x1126   : > { %v2610_v20 = vadd.f32 %v6101_v33, %v2596_v34 }
0x1128   : > { %v2614_v36 = vsel %vm857_vm3, %v2610_v20, -inf }
0x1129   : > { %2615 = vmax.xlane.f32.xlu1 %v2614_v36 }
0x113a   : > { %2709 = vrot.lane.b32.xlu1 %v6080_v19, %s5378_s15 }
0x113b   : > { %2633 = vrot.lane.b32.xlu0 %v6076_v17, %s5378_s15 }
0x113e   : > { %2787 = vrot.lane.b32.xlu1 %v6076_v17, %s5379_s26 }
0x113f   : > { %2865 = vrot.lane.b32.xlu0 %v6080_v19, %s5379_s26 }
0x11b2   : > { %v2613_v37 = vpop.xlane.xlu0 %2612 }
0x11b3   : > { %v2617_v38 = vsub.f32 %v2609_v31, %v2613_v37 }
0x11b5   : > { %v2619_v40 = vmul.f32 1.442695, %v2617_v38 }
0x11b6   : > { %v2634_v43 = vpop.permute.xlu0 %2633  ;;  %v2616_v45 = vpop.xlane.xlu1 %2615 }
0x11b7   : > { %4981 = vpow2.f32 %v2619_v40  ;;  %v2618_v47 = vsub.f32 %v2610_v20, %v2616_v45  ;;  %4658 = vmatpush3.msra.mxu1 %v2634_v43 }
0x11b8   : > { %4667 = vmatprep.subr.mxu1 %v5376_v39 }
0x11b9   : > { %v2621_v48 = vmul.f32 1.442695, %v2618_v47 }
0x11ba   : > { %v2710_v49 = vpop.permute.xlu1 %2709  ;;  %v2866_v42 = vpop.permute.xlu0 %2865 }
0x11bb   : > { %4983 = vpow2.f32 %v2621_v48  ;;  %4663 = vmatpush3.msra.mxu0 %v2710_v49 }
0x11bc   : > { %4672 = vmatprep.subr.mxu0 %v5376_v39 }
0x11be   : > { %v2788_v54 = vpop.permute.xlu1 %2787 }
0x11c1   : > { %v4982_v50 = vpop.eup %4981 }
0x11c2   : > { %v2623_v41 = vsel %vm857_vm3, %v4982_v50, 0.0 }
0x11c3   : > { %2624 = vadd.xlane.f32.xlu0 %v2623_v41 }
0x11c5   : > { %v4984_v52 = vpop.eup %4983 }
0x11c6   : > { %v2626_v53 = vsel %vm857_vm3, %v4984_v52, 0.0 }
0x11c7   : > { %2627 = vadd.xlane.f32.xlu1 %v2626_v53 }
0x11d8   : > { %2785 = vrot.lane.b32.xlu1 %v6083_v23, %s5378_s15 }
0x11d9   : > { %2863 = vrot.lane.b32.xlu0 %v6089_v25, %s5378_s15 }
0x1250   : > { %v2625_v55 = vpop.xlane.xlu0 %2624 }
0x1251   : > { %4985 = vrcp.f32 %v2625_v55 }
0x1254   : > { %v2628_v57 = vpop.xlane.xlu1 %2627  ;;  %v2864_v62 = vpop.permute.xlu0 %2863 }
0x1255   : > { %4987 = vrcp.f32 %v2628_v57 }
0x1258   : > { %v2786_v61 = vpop.permute.xlu1 %2785 }
0x125b   : > { %v4986_v58 = vpop.eup %4985 }
0x125c   : > { %v2631_v59 = vmul.f32 %v4986_v58, %v4982_v50 }
0x125e   : > { %4660 = vmatmul.mubr.msk.f32.vlgmr.msra.gmra.mrb[24].mxu1 %vm857_vm3, %v2631_v59 }
0x125f   : > { %v4988_v51 = vpop.eup %4987  ;;  %4668 = vmatpush3.xpose.msk.msra.mxu1 %vm857_vm3, %v2788_v54  ;;  %4669 = vmatprep.mubr.msk.f32.mxu1 %vm5377_vm1, %v5376_v39 }
0x1260   : > { %v2632_v60 = vmul.f32 %v4988_v51, %v4984_v52  ;;  %4677 = vmatprep.subr.mxu1 %v5376_v39 }
0x1262   : > { %4665 = vmatmul.mubr.msk.f32.vlgmr.msra.gmra.mrb[28].mxu0 %vm857_vm3, %v2632_v60  ;;  %4670 = vmatmul.mubr.msk.f32.vlgmr.msra.gmra.mrb[26].mxu1 %vm857_vm3, %v2786_v61 }
0x1263   : > { %4673 = vmatpush3.xpose.msk.msra.mxu0 %vm857_vm3, %v2866_v42  ;;  %4674 = vmatprep.mubr.msk.f32.mxu0 %vm5377_vm1, %v5376_v39 }
0x1264   : > { %4682 = vmatprep.subr.mxu0 %v5376_v39  ;;  %4679 = vmatprep.mubr.msk.f32.mxu1 %vm5377_vm1, %v5376_v39 }
0x1266   : > { %4675 = vmatmul.mubr.msk.f32.vlgmr.msra.gmra.mrb[30].mxu0 %vm857_vm3, %v2864_v62 }
0x1267   : > { %4684 = vmatprep.mubr.msk.f32.mxu0 %vm5377_vm1, %v5376_v39 }
0x1331   : > { %v6138_v56 = vpop.f32.mrb[24].mxu1 }
0x1332   : > { %v4661_v0 = vpop.f32.mrb[25].mxu1 }
0x1335   : > { %v6140_v2 = vpop.f32.mrb[28].mxu0  ;;  %v2859_v44 = vpop.f32.mrb[26].mxu1 }
0x1336   : > { %v2941_v4 = vmul.f32 0.35355338, %v2859_v44  ;;  %v4666_v63 = vpop.f32.mrb[29].mxu0  ;;  %v4671_v3 = vpop.f32.mrb[27].mxu1 }
0x1338   : > { %v2943_v6 = vadd.f32 %v6098_v28, %v2941_v4 }
0x1339   : > { %v2937_v7 = vpop.f32.mrb[30].mxu0 }
0x133a   : > { %v2942_v8 = vmul.f32 0.35355338, %v2937_v7  ;;  %v4676_v9 = vpop.f32.mrb[31].mxu0  ;;  %v2945_v10 = vsel %vm857_vm3, %v2943_v6, -inf }
0x133b   : > { %2946 = vmax.xlane.f32.xlu1 %v2945_v10 }
0x133c   : > { %v2944_v46 = vadd.f32 %v6101_v33, %v2942_v8 }
0x133e   : > { %v2948_v11 = vsel %vm857_vm3, %v2944_v46, -inf }
0x133f   : > { %2949 = vmax.xlane.f32.xlu0 %v2948_v11 }
0x134c   : > { %3043 = vrot.lane.b32.xlu1 %v6080_v19, %s5381_s13 }
0x1350   : > { %3121 = vrot.lane.b32.xlu1 %v6076_v17, %s5380_s3 }
0x1355   : > { %2967 = vrot.lane.b32.xlu0 %v6076_v17, %s5381_s13 }
0x1359   : > { %3199 = vrot.lane.b32.xlu0 %v6080_v19, %s5380_s3 }
0x13c8   : > { %v2947_v12 = vpop.xlane.xlu1 %2946 }
0x13c9   : > { %v2951_v13 = vsub.f32 %v2943_v6, %v2947_v12 }
0x13cb   : > { %v2953_v16 = vmul.f32 1.442695, %v2951_v13 }
0x13cc   : > { %v3044_v18 = vpop.permute.xlu1 %3043  ;;  %v2950_v21 = vpop.xlane.xlu0 %2949 }
0x13cd   : > { %4989 = vpow2.f32 %v2953_v16  ;;  %v2952_v24 = vsub.f32 %v2944_v46, %v2950_v21  ;;  %4683 = vmatpush3.msra.mxu0 %v3044_v18 }
0x13ce   : > { %4692 = vmatprep.subr.mxu0 %v5376_v39 }
0x13cf   : > { %v2955_v26 = vmul.f32 1.442695, %v2952_v24 }
0x13d0   : > { %v2968_v27 = vpop.permute.xlu0 %2967  ;;  %v3122_v22 = vpop.permute.xlu1 %3121 }
0x13d1   : > { %4991 = vpow2.f32 %v2955_v26  ;;  %4678 = vmatpush3.msra.mxu1 %v2968_v27 }
0x13d2   : > { %4687 = vmatprep.subr.mxu1 %v5376_v39 }
0x13d4   : > { %v3200_v34 = vpop.permute.xlu0 %3199 }
0x13d7   : > { %v4990_v29 = vpop.eup %4989 }
0x13d8   : > { %v2957_v30 = vsel %vm857_vm3, %v4990_v29, 0.0 }
0x13d9   : > { %2958 = vadd.xlane.f32.xlu0 %v2957_v30 }
0x13db   : > { %v4992_v31 = vpop.eup %4991 }
0x13dc   : > { %v2960_v32 = vsel %vm857_vm3, %v4992_v31, 0.0 }
0x13dd   : > { %2961 = vadd.xlane.f32.xlu1 %v2960_v32 }
0x13ee   : > { %3119 = vrot.lane.b32.xlu1 %v6083_v23, %s5379_s26 }
0x13ef   : > { %3197 = vrot.lane.b32.xlu0 %v6089_v25, %s5379_s26 }
0x1466   : > { %v2959_v35 = vpop.xlane.xlu0 %2958 }
0x1467   : > { %4993 = vrcp.f32 %v2959_v35 }
0x146a   : > { %v2962_v20 = vpop.xlane.xlu1 %2961  ;;  %v3198_v45 = vpop.permute.xlu0 %3197 }
0x146b   : > { %4995 = vrcp.f32 %v2962_v20 }
0x146e   : > { %v3120_v43 = vpop.permute.xlu1 %3119 }
0x1471   : > { %v4994_v36 = vpop.eup %4993 }
0x1472   : > { %v2965_v37 = vmul.f32 %v4994_v36, %v4990_v29 }
0x1474   : > { %4680 = vmatmul.mubr.msk.f32.vlgmr.msra.gmra.mrb[28].mxu1 %vm857_vm3, %v2965_v37 }
0x1475   : > { %v4996_v38 = vpop.eup %4995  ;;  %4688 = vmatpush3.xpose.msk.msra.mxu1 %vm857_vm3, %v3122_v22  ;;  %4689 = vmatprep.mubr.msk.f32.mxu1 %vm5377_vm1, %v5376_v39 }
0x1476   : > { %v2966_v40 = vmul.f32 %v4996_v38, %v4992_v31  ;;  %4697 = vmatprep.subr.mxu1 %v5376_v39 }
0x1478   : > { %4685 = vmatmul.mubr.msk.f32.vlgmr.msra.gmra.mrb[32].mxu0 %vm857_vm3, %v2966_v40  ;;  %4690 = vmatmul.mubr.msk.f32.vlgmr.msra.gmra.mrb[30].mxu1 %vm857_vm3, %v3120_v43 }
0x1479   : > { %4693 = vmatpush3.xpose.msk.msra.mxu0 %vm857_vm3, %v3200_v34  ;;  %4694 = vmatprep.mubr.msk.f32.mxu0 %vm5377_vm1, %v5376_v39 }
0x147a   : > { %4702 = vmatprep.subr.mxu0 %v5376_v39  ;;  %4699 = vmatprep.mubr.msk.f32.mxu1 %vm5377_vm1, %v5376_v39 }
0x147c   : > { %4695 = vmatmul.mubr.msk.f32.vlgmr.msra.gmra.mrb[34].mxu0 %vm857_vm3, %v3198_v45 }
0x147d   : > { %4704 = vmatprep.mubr.msk.f32.mxu0 %vm5377_vm1, %v5376_v39 }
0x1547   : > { %v6178_v47 = vpop.f32.mrb[28].mxu1 }
0x1548   : > { %v4681_v48 = vpop.f32.mrb[29].mxu1 }
0x154b   : > { %v6180_v49 = vpop.f32.mrb[32].mxu0  ;;  %v3193_v50 = vpop.f32.mrb[30].mxu1 }
0x154c   : > { %v4914_v41 = vpack.i.bf16 %v6180_v49, %v6178_v47  ;;  %v3275_v52 = vmul.f32 0.35355338, %v3193_v50  ;;  %v4686_v53 = vpop.f32.mrb[33].mxu0  ;;  %v4691_v42 = vpop.f32.mrb[31].mxu1 }
0x154e   : > { %v3277_v54 = vadd.f32 %v6098_v28, %v3275_v52 }
0x154f   : > { %v3271_v55 = vpop.f32.mrb[34].mxu0 }
0x1550   : > { %v3276_v57 = vmul.f32 0.35355338, %v3271_v55  ;;  %v4696_v58 = vpop.f32.mrb[35].mxu0  ;;  %v3279_v59 = vsel %vm857_vm3, %v3277_v54, -inf }
0x1551   : > { %3280 = vmax.xlane.f32.xlu1 %v3279_v59 }
0x1552   : > { %v3278_v51 = vadd.f32 %v6101_v33, %v3276_v57 }
0x1554   : > { %v3282_v60 = vsel %vm857_vm3, %v3278_v51, -inf }
0x1555   : > { %3283 = vmax.xlane.f32.xlu0 %v3282_v60  ;;  %v4938_v60 = vld [vmem:[%s619_s0 + $0x8] sm:$0xff]  }
0x1562   : > { %3377 = vrot.lane.b32.xlu1 %v6080_v19, %s5382_s21 }
0x1566   : > { %3455 = vrot.lane.b32.xlu1 %v6076_v17, %s5384_s27 }
0x156b   : > { %3301 = vrot.lane.b32.xlu0 %v6076_v17, %s5382_s21 }
0x156f   : > { %3533 = vrot.lane.b32.xlu0 %v6080_v19, %s5384_s27 }
0x15de   : > { %v3281_v61 = vpop.xlane.xlu1 %3280 }
0x15df   : > { %v3285_v62 = vsub.f32 %v3277_v54, %v3281_v61 }
0x15e1   : > { %v3287_v0 = vmul.f32 1.442695, %v3285_v62 }
0x15e2   : > { %v3378_v44 = vpop.permute.xlu1 %3377  ;;  %v3284_v4 = vpop.xlane.xlu0 %3283 }
0x15e3   : > { %4997 = vpow2.f32 %v3287_v0  ;;  %v3286_v63 = vsub.f32 %v3278_v51, %v3284_v4  ;;  %4703 = vmatpush3.msra.mxu0 %v3378_v44 }
0x15e4   : > { %4712 = vmatprep.subr.mxu0 %v5376_v39 }
0x15e5   : > { %v3289_v3 = vmul.f32 1.442695, %v3286_v63 }
0x15e6   : > { %v3302_v6 = vpop.permute.xlu0 %3301  ;;  %v3456_v11 = vpop.permute.xlu1 %3455 }
0x15e7   : > { %4999 = vpow2.f32 %v3289_v3  ;;  %4698 = vmatpush3.msra.mxu1 %v3302_v6 }
0x15e8   : > { %4707 = vmatprep.subr.mxu1 %v5376_v39 }
0x15ea   : > { %v3534_v46 = vpop.permute.xlu0 %3533 }
0x15ed   : > { %v4998_v7 = vpop.eup %4997 }
0x15ee   : > { %v3291_v8 = vsel %vm857_vm3, %v4998_v7, 0.0 }
0x15ef   : > { %3292 = vadd.xlane.f32.xlu0 %v3291_v8 }
0x15f1   : > { %v5000_v9 = vpop.eup %4999 }
0x15f2   : > { %v3294_v10 = vsel %vm857_vm3, %v5000_v9, 0.0 }
0x15f3   : > { %3295 = vadd.xlane.f32.xlu1 %v3294_v10 }
0x1604   : > { %3453 = vrot.lane.b32.xlu1 %v6083_v23, %s5381_s13 }
0x1605   : > { %3531 = vrot.lane.b32.xlu0 %v6089_v25, %s5381_s13 }
0x167c   : > { %v3293_v12 = vpop.xlane.xlu0 %3292 }
0x167d   : > { %5001 = vrcp.f32 %v3293_v12 }
0x1680   : > { %v3296_v13 = vpop.xlane.xlu1 %3295  ;;  %v3532_v24 = vpop.permute.xlu0 %3531 }
0x1681   : > { %5003 = vrcp.f32 %v3296_v13 }
0x1684   : > { %v3454_v25 = vpop.permute.xlu1 %3453 }
0x1687   : > { %v5002_v16 = vpop.eup %5001 }
0x1688   : > { %v3299_v18 = vmul.f32 %v5002_v16, %v4998_v7 }
0x168a   : > { %4700 = vmatmul.mubr.msk.f32.vlgmr.msra.gmra.mrb[32].mxu1 %vm857_vm3, %v3299_v18 }
0x168b   : > { %v5004_v21 = vpop.eup %5003  ;;  %4708 = vmatpush3.xpose.msk.msra.mxu1 %vm857_vm3, %v3456_v11  ;;  %4709 = vmatprep.mubr.msk.f32.mxu1 %vm5377_vm1, %v5376_v39 }
0x168c   : > { %v3300_v23 = vmul.f32 %v5004_v21, %v5000_v9  ;;  %4717 = vmatprep.subr.mxu1 %v5376_v39 }
0x168e   : > { %4705 = vmatmul.mubr.msk.f32.vlgmr.msra.gmra.mrb[36].mxu0 %vm857_vm3, %v3300_v23  ;;  %4710 = vmatmul.mubr.msk.f32.vlgmr.msra.gmra.mrb[34].mxu1 %vm857_vm3, %v3454_v25 }
0x168f   : > { %4713 = vmatpush3.xpose.msk.msra.mxu0 %vm857_vm3, %v3534_v46  ;;  %4714 = vmatprep.mubr.msk.f32.mxu0 %vm5377_vm1, %v5376_v39 }
0x1690   : > { %4722 = vmatprep.subr.mxu0 %v5376_v39  ;;  %4719 = vmatprep.mubr.msk.f32.mxu1 %vm5377_vm1, %v5376_v39 }
0x1692   : > { %4715 = vmatmul.mubr.msk.f32.vlgmr.msra.gmra.mrb[38].mxu0 %vm857_vm3, %v3532_v24 }
0x1693   : > { %4724 = vmatprep.mubr.msk.f32.mxu0 %vm5377_vm1, %v5376_v39 }
0x175d   : > { %v3373_v26 = vpop.f32.mrb[32].mxu1 }
0x175e   : > { %v4701_v27 = vpop.f32.mrb[33].mxu1 }
0x1761   : > { %v3449_v29 = vpop.f32.mrb[36].mxu0  ;;  %v3527_v30 = vpop.f32.mrb[34].mxu1 }
0x1762   : > { %v4919_v31 = vpack.i.bf16 %v3449_v29, %v3373_v26  ;;  %v3609_v32 = vmul.f32 0.35355338, %v3527_v30  ;;  %v4706_v34 = vpop.f32.mrb[37].mxu0  ;;  %v4711_v22 = vpop.f32.mrb[35].mxu1 }
0x1764   : > { %v3611_v35 = vadd.f32 %v6098_v28, %v3609_v32 }
0x1765   : > { %v3605_v20 = vpop.f32.mrb[38].mxu0 }
0x1766   : > { %v3610_v36 = vmul.f32 0.35355338, %v3605_v20  ;;  %v4716_v37 = vpop.f32.mrb[39].mxu0  ;;  %v3613_v38 = vsel %vm857_vm3, %v3611_v35, -inf }
0x1767   : > { %3614 = vmax.xlane.f32.xlu1 %v3613_v38 }
0x1768   : > { %v3612_v40 = vadd.f32 %v6101_v33, %v3610_v36 }
0x176a   : > { %v3616_v43 = vsel %vm857_vm3, %v3612_v40, -inf }
0x176b   : > { %3617 = vmax.xlane.f32.xlu0 %v3616_v43  ;;  %v4940_v43 = vld [vmem:[%s628_s17 + $0x8] sm:$0xff]  }
0x17f4   : > { %v3615_v45 = vpop.xlane.xlu1 %3614 }
0x17f5   : > { %v3619_v48 = vsub.f32 %v3611_v35, %v3615_v45  ;;  %v4941_v45 = vld [vmem:[%s5830_s20] sm:$0xff]  }
0x17f7   : > { %v3621_v50 = vmul.f32 1.442695, %v3619_v48  ;;  %v4942_v48 = vld [vmem:[%s5830_s20 + $0x8] sm:$0xff]  }
0x17f8   : > { %v3618_v52 = vpop.xlane.xlu0 %3617 }
0x17f9   : > { %5005 = vpow2.f32 %v3621_v50  ;;  %v3620_v53 = vsub.f32 %v3612_v40, %v3618_v52  ;;  %v4939_v40 = vld [vmem:[%s628_s17] sm:$0xff]  }
0x17fb   : > { %v3623_v42 = vmul.f32 1.442695, %v3620_v53 }
0x17fd   : > { %5007 = vpow2.f32 %v3623_v42 }
0x1803   : > { %v5006_v28 = vpop.eup %5005 }
0x1804   : > { %v3625_v54 = vsel %vm857_vm3, %v5006_v28, 0.0 }
0x1805   : > { %3626 = vadd.xlane.f32.xlu0 %v3625_v54 }
0x1807   : > { %v5008_v55 = vpop.eup %5007 }
0x1808   : > { %v3628_v57 = vsel %vm857_vm3, %v5008_v55, 0.0 }
0x1809   : > { %3629 = vadd.xlane.f32.xlu1 %v3628_v57 }
0x181a   : > { %3711 = vrot.lane.b32.xlu1 %v6080_v19, %s5383_s12 }
0x181b   : > { %3635 = vrot.lane.b32.xlu0 %v6076_v17, %s5383_s12 }
0x181e   : > { %4915 = vrot.lane.b32.xlu1 %v4914_v41, %s5389_s9  ;;  %v4937_v41 = vld [vmem:[%s619_s0] sm:$0xff]  }
0x181f   : > { %4920 = vrot.lane.b32.xlu0 %v4919_v31, %s5390_s24 }
0x1892   : > { %v3627_v33 = vpop.xlane.xlu0 %3626 }
0x1893   : > { %5009 = vrcp.f32 %v3627_v33 }
0x1896   : > { %v3630_v58 = vpop.xlane.xlu1 %3629  ;;  %v3636_v59 = vpop.permute.xlu0 %3635 }
0x1897   : > { %5011 = vrcp.f32 %v3630_v58  ;;  %4718 = vmatpush3.msra.mxu1 %v3636_v59  ;;  %v3908_v59 = vsub.s32 3, %v6058_v1 }
0x1898   : > { %4727 = vmatprep.subr.bf16.mxu1 %v5376_v39 }
0x189a   : > { %v3712_v19 = vpop.permute.xlu1 %3711  ;;  %v4921_v7 = vpop.permute.xlu0 %4920 }
0x189b   : > { %4723 = vmatpush3.msra.mxu0 %v3712_v19  ;;  %v4923_v10 = vunpack.i.h.bf16 %v4921_v7  ;;  %v4922_v46 = vunpack.i.l.bf16 %v4921_v7 }
0x189c   : > { %4735 = vmatprep.subr.bf16.mxu0 %v5376_v39 }
0x189d   : > { %v5010_v17 = vpop.eup %5009 }
0x189e   : > { %v3633_v51 = vmul.f32 %v5010_v17, %v5006_v28  ;;  %v4916_v63 = vpop.permute.xlu1 %4915 }
0x189f   : > { %v4918_v3 = vunpack.i.h.bf16 %v4916_v63  ;;  %v4917_v6 = vunpack.i.l.bf16 %v4916_v63 }
0x18a0   : > { %4720 = vmatmul.mubr.msk.f32.vlgmr.msra.gmra.mrb[36].mxu1 %vm857_vm3, %v3633_v51 }
0x18a1   : > { %v5012_v47 = vpop.eup %5011  ;;  %4731 = vmatprep.mubr.msk.bf16.mxu1 %vm5377_vm1, %v5376_v39  ;;  %4728 = vmatpush3.bf16.msra.mxu1 %v4937_v41  ;;  %v3812_v8 = vsel %vm857_vm3, %v6140_v2, %v4918_v3  ;;  %v3811_v9 = vsel %vm857_vm3, %v6138_v56, %v4917_v6 }
0x18a2   : > { %v3634_v49 = vmul.f32 %v5012_v47, %v5008_v55  ;;  %4729 = vmatprep.subr.bf16.mxu1 %v5376_v39  ;;  %v3813_v16 = vsel %vm2215_vm4, %v3811_v9, %v4922_v46  ;;  %v3814_v18 = vsel %vm2215_vm4, %v3812_v8, %v4923_v10  ;;  %v3902_v55 = vsub.s32 2, %v6058_v1 }
0x18a3   : > { %v3909_v47 = vrot.slane %v6062_v5, %v3908_v59 }
0x18a4   : > { %4725 = vmatmul.mubr.msk.f32.vlgmr.msra.gmra.mrb[40].mxu0 %vm857_vm3, %v3634_v49  ;;  %v3903_v33 = vrot.slane %v6062_v5, %v3902_v55 }
0x18a5   : > { %4739 = vmatprep.mubr.msk.bf16.mxu0 %vm5377_vm1, %v5376_v39  ;;  %4730 = vmatpush3.bf16.msra.mxu1 %v4938_v60 }
0x18a6   : > { %4743 = vmatprep.subr.bf16.mxu1 %v5376_v39  ;;  %4736 = vmatpush3.bf16.msra.mxu0 %v4939_v40 }
0x18a7   : > { %4737 = vmatprep.subr.bf16.mxu0 %v5376_v39 }
0x18aa   : > { %4738 = vmatpush3.bf16.msra.mxu0 %v4940_v43 }
0x1973   : > { %v3707_v61 = vpop.f32.mrb[36].mxu1 }
0x1974   : > { %v4721_v62 = vpop.f32.mrb[37].mxu1 }
0x1975   : > { %v4943_v62 = vld [vmem:[%s5830_s20 + $0x10] sm:$0xff]  }
0x1977   : > { %v3783_v0 = vpop.f32.mrb[40].mxu0 }
0x1978   : > { %v4924_v44 = vpack.i.bf16 %v3783_v0, %v3707_v61  ;;  %v4726_v4 = vpop.f32.mrb[41].mxu0  ;;  %v4944_v0 = vld [vmem:[%s5830_s20 + $0x18] sm:$0xff]  }
0x197a   : > { %4925 = vrot.lane.b32.xlu1 %v4924_v44, %s5391_s8  ;;  %v3927_v44 = vsub.s32 6, %v6058_v1 }
0x197c   : > { %v3928_v4 = vrot.slane %v6062_v5, %v3927_v44 }
0x19ec   : > { %v4926_v11 = vpop.permute.xlu1 %4925 }
0x19ed   : > { %v4928_v12 = vunpack.i.h.bf16 %v4926_v11  ;;  %v4927_v13 = vunpack.i.l.bf16 %v4926_v11 }
0x19ef   : > { %v3816_v21 = vsel %vm2218_vm5, %v3814_v18, %v4928_v12  ;;  %v3815_v23 = vsel %vm2218_vm5, %v3813_v16, %v4927_v13  ;;  %v3990_v12 = vsub.s32 7, %v6058_v1 }
0x19f0   : > { %v3817_v25 = vpack.c.bf16 %v3816_v21, %v3815_v23 }
0x19f2   : > { %4732 = vmatmul.mubr.msk.bf16.vlgmr.msra.gmra.mrb[40].mxu1 %vm809_vm2, %v3817_v25 }
0x19f3   : > { %4751 = vmatprep.mubr.msk.bf16.mxu1 %vm5377_vm1, %v5376_v39  ;;  %4744 = vmatpush3.bf16.msra.mxu1 %v4941_v45  ;;  %v4091_v45 = vsub.s32 4, %v6058_v1 }
0x19f4   : > { %4745 = vmatprep.subr.bf16.mxu1 %v5376_v39 }
0x19f7   : > { %4746 = vmatpush3.bf16.msra.mxu1 %v4942_v48  ;;  %v4097_v48 = vsub.s32 5, %v6058_v1 }
0x19f8   : > { %4747 = vmatprep.subr.bf16.mxu1 %v5376_v39 }
0x19fb   : > { %4748 = vmatpush3.bf16.msra.mxu1 %v4943_v62 }
0x19fc   : > { %4749 = vmatprep.subr.bf16.mxu1 %v5376_v39  ;;  %v3991_v39 = vrot.slane %v6062_v5, %v3990_v12 }
0x19ff   : > { %4750 = vmatpush3.bf16.msra.mxu1 %v4944_v0 }
0x1ac5   : > { %v3867_v56 = vpop.f32.mrb[40].mxu1 }
0x1ac6   : > { %v3868_v2 = vadd.f32 %v3867_v56, %v6067_v14  ;;  %v4733_v24 = vpop.f32.mrb[41].mxu1 }
0x1ac7   : > { %v3870_v26 = vpop.f32.mrb[42].mxu1 }
0x1ac8   : > { %v3871_v27 = vadd.f32 %v3870_v26, %v6069_v15  ;;  %v4734_v29 = vpop.f32.mrb[43].mxu1  ;;  %v3874_v30 = vsel %vm809_vm2, %v3868_v2, 0.0 }
0x1ac9   : > { %3875 = vadd.xlane.f32.xlu0 %v3874_v30 }
0x1aca   : > { %v3877_v31 = vsel %vm809_vm2, %v3871_v27, 0.0 }
0x1acb   : > { %3878 = vadd.xlane.f32.xlu1 %v3877_v31 }
0x1b56   : > { %v3876_v32 = vpop.xlane.xlu0 %3875 }
0x1b57   : > { %v3880_v34 = vmul.f32 0.03125, %v3876_v32 }
0x1b58   : > { %v3879_v22 = vpop.xlane.xlu1 %3878 }
0x1b59   : > { %v3882_v35 = vsub.f32 %v3868_v2, %v3880_v34  ;;  %v3881_v14 = vmul.f32 0.03125, %v3879_v22 }
0x1b5b   : > { %v3883_v20 = vsub.f32 %v3871_v27, %v3881_v14  ;;  %v3884_v36 = vmul.f32 %v3882_v35, %v3882_v35 }
0x1b5d   : > { %v3886_v15 = vsel %vm809_vm2, %v3884_v36, 0.0  ;;  %v3885_v37 = vmul.f32 %v3883_v20, %v3883_v20 }
0x1b5e   : > { %3887 = vadd.xlane.f32.xlu0 %v3886_v15 }
0x1b5f   : > { %v3889_v38 = vsel %vm809_vm2, %v3885_v37, 0.0 }
0x1b62   : > { %3890 = vadd.xlane.f32.xlu0 %v3889_v38 }
0x1beb   : > { %v3888_v50 = vpop.xlane.xlu0 %3887 }
0x1bec   : > { %v3892_v52 = vmul.f32 0.03125, %v3888_v50  ;;  %v4092_v50 = vrot.slane %v6062_v5, %v4091_v45 }
0x1bee   : > { %v3894_v53 = vadd.f32 1e-06, %v3892_v52 }
0x1bef   : > { %v3891_v42 = vpop.xlane.xlu0 %3890 }
0x1bf0   : > { %5013 = vrsqrt.f32 %v3894_v53  ;;  %v3893_v28 = vmul.f32 0.03125, %v3891_v42  ;;  %v4098_v53 = vrot.slane %v6062_v5, %v4097_v48 }
0x1bf2   : > { %v3895_v54 = vadd.f32 1e-06, %v3893_v28 }
0x1bf4   : > { %5015 = vrsqrt.f32 %v3895_v54 }
0x1bfa   : > { %v5014_v57 = vpop.eup %5013 }
0x1bfb   : > { %v3898_v58 = vmul.f32 %v5014_v57, %v3882_v35 }
0x1bfd   : > { %v3904_v17 = vmul.f32 %v3903_v33, %v3898_v58 }
0x1bfe   : > { %v5016_v19 = vpop.eup %5015 }
0x1bff   : > { %v3899_v51 = vmul.f32 %v5016_v19, %v3883_v20  ;;  %v3910_v41 = vadd.f32 %v3909_v47, %v3904_v17 }
0x1c01   : > { %v3905_v49 = vmul.f32 %v3903_v33, %v3899_v51 }
0x1c03   : > { %v3911_v60 = vadd.f32 %v3909_v47, %v3905_v49 }
0x1c05   : > { %v3924_v61 = vpack.c.bf16 %v3911_v60, %v3910_v41 }
0x1c07   : > { %4740 = vmatmul.mubr.msk.bf16.vlgmr.msra.gmra.mrb[44].mxu0 %vm809_vm2, %v3924_v61 }
0x1cda   : > { %v3978_v63 = vpop.f32.mrb[44].mxu0 }
0x1cdb   : > { %v3979_v3 = vadd.f32 %v3978_v63, %v3928_v4  ;;  %v4741_v6 = vpop.f32.mrb[45].mxu0 }
0x1cdc   : > { %v3981_v7 = vpop.f32.mrb[46].mxu0 }
0x1cdd   : > { %v3982_v8 = vadd.f32 %v3981_v7, %v3928_v4  ;;  %v4742_v9 = vpop.f32.mrb[47].mxu0  ;;  %v3985_v10 = vmax.f32 %v3979_v3, 0.0 }
0x1cdf   : > { %v3986_v46 = vmax.f32 %v3982_v8, 0.0 }
0x1ce1   : > { %v3987_v11 = vpack.c.bf16 %v3986_v46, %v3985_v10 }
0x1ce3   : > { %4752 = vmatmul.mubr.msk.bf16.vlgmr.msra.gmra.mrb[44].mxu1 %vm4016_vm6, %v3987_v11 }
0x1db6   : > { %v4054_v13 = vpop.f32.mrb[44].mxu1 }
0x1db7   : > { %v4055_v16 = vadd.f32 %v4054_v13, %v3991_v39  ;;  %v4753_v18 = vpop.f32.mrb[45].mxu1 }
0x1db8   : > { %v4057_v21 = vpop.f32.mrb[46].mxu1 }
0x1db9   : > { %v4058_v23 = vadd.f32 %v4057_v21, %v3991_v39  ;;  %v4754_v25 = vpop.f32.mrb[47].mxu1  ;;  %v4061_v56 = vadd.f32 %v4055_v16, %v3910_v41 }
0x1dbb   : > { %v4063_v2 = vsel %vm809_vm2, %v4061_v56, 0.0  ;;  %v4062_v24 = vadd.f32 %v4058_v23, %v3911_v60 }
0x1dbc   : > { %4064 = vadd.xlane.f32.xlu1 %v4063_v2 }
0x1dbd   : > { %v4066_v26 = vsel %vm809_vm2, %v4062_v24, 0.0 }
0x1dbe   : > { %4067 = vadd.xlane.f32.xlu0 %v4066_v26 }
0x1e49   : > { %v4065_v27 = vpop.xlane.xlu1 %4064 }
0x1e4a   : > { %v4069_v29 = vmul.f32 0.03125, %v4065_v27 }
0x1e4b   : > { %v4068_v30 = vpop.xlane.xlu0 %4067 }
0x1e4c   : > { %v4071_v31 = vsub.f32 %v4061_v56, %v4069_v29  ;;  %v4070_v32 = vmul.f32 0.03125, %v4068_v30 }
0x1e4e   : > { %v4072_v34 = vsub.f32 %v4062_v24, %v4070_v32  ;;  %v4073_v22 = vmul.f32 %v4071_v31, %v4071_v31 }
0x1e50   : > { %v4075_v35 = vsel %vm809_vm2, %v4073_v22, 0.0  ;;  %v4074_v14 = vmul.f32 %v4072_v34, %v4072_v34 }
0x1e51   : > { %4076 = vadd.xlane.f32.xlu1 %v4075_v35 }
0x1e52   : > { %v4078_v20 = vsel %vm809_vm2, %v4074_v14, 0.0 }
0x1e53   : > { %4079 = vadd.xlane.f32.xlu0 %v4078_v20 }
0x1ede   : > { %v4077_v36 = vpop.xlane.xlu1 %4076 }
0x1edf   : > { %v4081_v15 = vmul.f32 0.03125, %v4077_v36 }
0x1ee0   : > { %v4080_v37 = vpop.xlane.xlu0 %4079 }
0x1ee1   : > { %v4083_v38 = vadd.f32 1e-06, %v4081_v15  ;;  %v4082_v40 = vmul.f32 0.03125, %v4080_v37 }
0x1ee3   : > { %5017 = vrsqrt.f32 %v4083_v38  ;;  %v4084_v43 = vadd.f32 1e-06, %v4082_v40 }
0x1ee5   : > { %5019 = vrsqrt.f32 %v4084_v43 }
0x1eed   : > { %v5018_v52 = vpop.eup %5017 }
0x1eee   : > { %v4087_v42 = vmul.f32 %v5018_v52, %v4071_v31 }
0x1eef   : > { %v5020_v28 = vpop.eup %5019 }
0x1ef0   : > { %v4093_v54 = vmul.f32 %v4092_v50, %v4087_v42  ;;  %v4088_v55 = vmul.f32 %v5020_v28, %v4072_v34  ;;  %4106 = sbr.rel (%p4436_p6) target bundleno = 7927 (0x1ef7), region = 120 }
0x1ef2   : > { %v4099_v57 = vadd.f32 %v4098_v53, %v4093_v54  ;;  %v4094_v33 = vmul.f32 %v4092_v50, %v4088_v55 }
0x1ef4   : > { %4101 = vst.msk [vmem:[#allocation2] sm:$0xff] %vm809_vm2, %v4099_v57  ;;  %v4100_v58 = vadd.f32 %v4098_v53, %v4094_v33  ;;  %4107 = vst.msk [vmem:[#allocation17] sm:$0xff] (!%p4436_p6), %vm809_vm2, %v4099_v57 }
0x1ef6   : > { %4102 = vst.msk [vmem:[#allocation2 + $0x8] sm:$0xff] %vm809_vm2, %v4100_v58  ;;  %4108 = vst.msk [vmem:[#allocation17 + $0x8] sm:$0xff] (!%p4436_p6), %vm809_vm2, %v4100_v58 }
0x1ef7 PF: > { %p4831_p12 = scmp.eq.s32.totalorder %s5490_s19, 1  ;;  %s5392_s25 = smov [#allocation17]  }
0x1ef8   : > { %s4115_s6 = sshll.u32 %s5392_s25, 4  ;;  %s4116_s6 = int_to_ptr.vmem [resolvable:$true] %s4115_s6 }
0x1ef9   : > { %s5279_s29 = scalar_lea.vmem %s4116_s6, 256  ;;  %p5286_p3 = scmp.lt.s32.totalorder %s4116_s6, %s4116_s6 }
0x1efa   : > { %p5280_p13 = scmp.ne.s32.totalorder %s4116_s6, %s5279_s29  ;;  %p5287_p4 = scmp.lt.s32.totalorder %s5279_s29, %s5279_s29 }
0x1efc   : > { %p5281_p0 = pnand %p5280_p13, %p4831_p12  ;;  %p5288_p11 = por %p5287_p4, %p5286_p3 }
0x1efe   : > { %p5282_p5 = pneg %p5281_p0 }
0x1f00   : > { %p5289_p1 = pnand %p5288_p11, %p5282_p5 }
0x1f02   : > { %5292 = shalt.err (!%p5289_p1)
}
0x1f03   : > { %s6430_s22 = sld [smem:[#allocation37_spill]] }
0x1f09   : > { %s5293_s28 = scalar_lea.hbm %s6430_s22, 256 }
0x1f0a   : > { %p5294_p7 = scmp.ne.s32.totalorder %s6430_s22, %s5293_s28  ;;  %p5299_p8 = scmp.lt.u32.totalorder %s5293_s28, %s6430_s22 }
0x1f0c   : > { %p5295_p9 = pnand %p5294_p7, %p4831_p12 }
0x1f0e   : > { %p5296_p10 = pneg %p5295_p9 }
0x1f10   : > { %p5301_p2 = pnand %p5299_p8, %p5296_p10 }
0x1f12   : > { %5304 = shalt.err (!%p5301_p2)
}
0x1f13   : > { %s5393_s26 = smov 128  }
0x1f14   : > { %4786 = dma.vmem_to_hbm [thread:$0]  (%p4831_p12), %s4116_s6, 256, %s6430_s22, [#allocation5], %s5393_s26, %s5393_s26, %s5389_s9  }
0x1f15   : > { %5342 = dma.done.wait (%p4831_p12), [#allocation5], 256  }
0x1f16   : > { %5344 = vsyncadd (%p4831_p12), [#allocation5], 4294967040 }
0x1f17 PF: > { %s6431_s16 = sld [smem:[#allocation25_spill]]  ;;  %s6432_s21 = sld [smem:[#allocation24_spill]] }
0x1f18   : > { %s6433_s15 = sld [smem:[#allocation26_spill]]  ;;  %s6434_s29 = smov %s5351_s30 }
0x1f1d   : > { %p26_p6 = scmp.ge.s32.totalorder %s6431_s16, 4   ;;  %s6435_s30 = smov %s6432_s21 }
0x1f1f   :  { %28 = sbr.rel (!%p26_p6) target bundleno = 17 (0x11), region = 181 }
0x1f26   :  { %4131 = vsyncpa [#allocation4], 1 }
0x1f27   :  { %4133 = vsyncpa [#allocation4 + $0x1], 1 }
0x1f28   :  { %4134 = vsyncpa [#allocation7], 1 }
0x1f29   :  { %4135 = vsyncpa [#allocation10], 1 }
0x1f2a   :  { %4136 = vsyncpa [#allocation13], 1 }
0x1f2b   :  { %4137 = vsyncpa [#allocation5], 1 }
0x1f2c   :  { %4139 = vsyncpa [#allocation5 + $0x1], 1 }

</bundles_post_ra>
